<compile_context>
chip_gen: v5e
topology: v5e:2x2
jax: 0.10.0
libtpu: 0.0.40
codegen_flags: <defaults>
</compile_context>

<pallas_src>
import functools
import math

import jax
import jax.numpy as jnp
from jax.experimental import pallas as pl
from jax.experimental.pallas import tpu as pltpu


def _layer_norm_f32(v, g, b, eps):
    mu = jnp.mean(v, axis=-1, keepdims=True)
    var = jnp.mean((v - mu) ** 2, axis=-1, keepdims=True)
    return (v - mu) * jax.lax.rsqrt(var + eps) * g + b


# ----------------------------------------------------------------------------
# Fused kernel: grid = (batch_block, layer).  One grid step = one encoder
# layer applied to a (Bblk*S, D) activation block carried in VMEM.
# ----------------------------------------------------------------------------
def encoder_stack_kernel(x_ref, wqkv_ref, bqkv_ref, wo_ref, w1_ref, b1_ref,
                         w2_ref, vec_ref, out_ref, acc_ref,
                         *, batch_block, seq_len, num_heads, eps,
                         compute_dtype):
    layer = pl.program_id(1)

    # Load the activation block into the f32 VMEM carry at the first layer.
    @pl.when(layer == 0)
    def _():
        acc_ref[...] = x_ref[...].astype(jnp.float32)

    x = acc_ref[...]                                  # (Bblk*S, D) f32
    D = x.shape[-1]
    S = seq_len
    H = num_heads
    hd = D // H
    scale = hd ** -0.5
    cdt = compute_dtype
    exact_softmax = jnp.dtype(cdt) == jnp.dtype(jnp.float32)

    vec = vec_ref[0]                                  # (6, D) f32
    ln1_g, ln1_b = vec[0:1, :], vec[1:2, :]
    ln2_g, ln2_b = vec[2:3, :], vec[3:4, :]
    bo, b2 = vec[4:5, :], vec[5:6, :]

    # ------------------ self-attention block ------------------
    residual = x
    h = _layer_norm_f32(x, ln1_g, ln1_b, eps)
    hb = h.astype(cdt)
    # Fused QKV projection on the flattened (Bblk*S, D) LHS.
    qkv = jnp.dot(hb, wqkv_ref[0],
                  preferred_element_type=jnp.float32) + bqkv_ref[0]  # (N, 3D) f32
    wo = wo_ref[0]                                    # (D, D) cdt

    attn_rows = []
    for b in range(batch_block):
        rows = slice(b * S, (b + 1) * S)
        attn_b = None
        for head in range(H):
            c0 = head * hd
            qh = qkv[rows, c0:c0 + hd].astype(cdt)                    # (S, hd)
            kh = qkv[rows, D + c0:D + c0 + hd].astype(cdt)            # (S, hd)
            vh = qkv[rows, 2 * D + c0:2 * D + c0 + hd].astype(cdt)    # (S, hd)
            # scores = q @ k^T  (contract the shared hd lane dim), f32 acc.
            s = jax.lax.dot_general(
                qh, kh, (((1,), (1,)), ((), ())),
                preferred_element_type=jnp.float32) * scale           # (S, S)
            s = s - jnp.max(s, axis=-1, keepdims=True)
            p = jnp.exp(s)
            denom = jnp.sum(p, axis=-1, keepdims=True)
            if exact_softmax:
                p = p / denom
            else:
                p = p * pl.reciprocal(denom, approx=True)
            ctx = jnp.dot(p.astype(cdt), vh,
                          preferred_element_type=jnp.float32)         # (S, hd)
            # Head "concat" fused into the output projection.
            contrib = jnp.dot(ctx.astype(cdt), wo[c0:c0 + hd, :],
                              preferred_element_type=jnp.float32)     # (S, D)
            attn_b = contrib if attn_b is None else attn_b + contrib
        attn_rows.append(attn_b)
    attn = attn_rows[0] if batch_block == 1 else jnp.concatenate(attn_rows,
                                                                 axis=0)
    x = residual + attn + bo

    # ------------------------ MLP block ------------------------
    residual = x
    h = _layer_norm_f32(x, ln2_g, ln2_b, eps)
    h = jnp.dot(h.astype(cdt), w1_ref[0],
                preferred_element_type=jnp.float32) + b1_ref[0]       # (N, I)
    c = math.sqrt(2.0 / math.pi)                                      # gelu_pytorch_tanh
    h = 0.5 * h * (1.0 + jnp.tanh(c * (h + 0.044715 * (h ** 3))))
    h = jnp.dot(h.astype(cdt), w2_ref[0],
                preferred_element_type=jnp.float32) + b2
    x = residual + h

    acc_ref[...] = x

    # Write back to HBM only after the last layer.
    @pl.when(layer == pl.num_programs(1) - 1)
    def _():
        out_ref[...] = acc_ref[...].astype(out_ref.dtype)


def _pick_batch_block(batch, requested=None):
    if requested is not None:
        assert batch % requested == 0, "batch_block must divide batch"
        return requested
    # Prefer 4-8x weight amortization; keep >=2 parallel blocks (v7x megacore)
    # when the batch allows it.
    for bb in (8, 4, 2, 1):
        if batch % bb == 0 and (batch // bb >= 2 or bb == batch):
            return bb
    return 1


# ----------------------------------------------------------------------------
# Wrapper: one fused pallas_call for the whole encoder stack.
# ----------------------------------------------------------------------------
def siglip_encoder(x, layer_params, *, num_heads, eps=1e-6,
                   compute_dtype=jnp.bfloat16, batch_block=None):
    num_layers = len(layer_params)
    B, S, D = x.shape
    assert D % num_heads == 0, "hidden_size must be divisible by num_heads"
    inter = layer_params[0]["w1"].shape[-1]
    cdt = compute_dtype
    Bblk = _pick_batch_block(B, batch_block)
    nb = B // Bblk

    def stack(name, dtype):
        return jnp.stack([jnp.asarray(p[name]) for p in layer_params],
                         axis=0).astype(dtype)

    # Fused / packed per-layer parameters (leading layer axis L).
    wqkv = jnp.concatenate([stack("wq", cdt), stack("wk", cdt),
                            stack("wv", cdt)], axis=-1)            # (L, D, 3D)
    bqkv = jnp.concatenate([stack("bq", jnp.float32),
                            stack("bk", jnp.float32),
                            stack("bv", jnp.float32)], axis=-1)    # (L, 1, 3D)
    wo = stack("wo", cdt)                                           # (L, D, D)
    w1 = stack("w1", cdt)                                           # (L, D, I)
    b1 = stack("b1", jnp.float32)                                   # (L, 1, I)
    w2 = stack("w2", cdt)                                           # (L, I, D)
    vecs = jnp.concatenate([stack("ln1_g", jnp.float32),
                            stack("ln1_b", jnp.float32),
                            stack("ln2_g", jnp.float32),
                            stack("ln2_b", jnp.float32),
                            stack("bo", jnp.float32),
                            stack("b2", jnp.float32)], axis=1)      # (L, 6, D)
    stacked = [wqkv, bqkv, wo, w1, b1, w2, vecs]

    x2d = x.reshape(B * S, D)

    kernel = functools.partial(encoder_stack_kernel, batch_block=Bblk,
                               seq_len=S, num_heads=num_heads, eps=eps,
                               compute_dtype=cdt)

    in_specs = [
        pl.BlockSpec((Bblk * S, D), lambda i, l: (i, 0)),           # activations
        pl.BlockSpec((1, D, 3 * D), lambda i, l: (l, 0, 0)),        # wqkv
        pl.BlockSpec((1, 1, 3 * D), lambda i, l: (l, 0, 0)),        # bqkv
        pl.BlockSpec((1, D, D), lambda i, l: (l, 0, 0)),            # wo
        pl.BlockSpec((1, D, inter), lambda i, l: (l, 0, 0)),        # w1
        pl.BlockSpec((1, 1, inter), lambda i, l: (l, 0, 0)),        # b1
        pl.BlockSpec((1, inter, D), lambda i, l: (l, 0, 0)),        # w2
        pl.BlockSpec((1, 6, D), lambda i, l: (l, 0, 0)),            # packed vectors
    ]
    out_spec = pl.BlockSpec((Bblk * S, D), lambda i, l: (i, 0))

    # ----- VMEM budget: double-buffered per-layer weights + working set -----
    per_layer_w_bytes = sum(int(a.size) * a.dtype.itemsize
                            for a in stacked) // num_layers
    io_block_bytes = 2 * 2 * Bblk * S * D * x.dtype.itemsize        # in+out, 2x buf
    work_bytes = 4 * (Bblk * S * (9 * D + 2 * inter) + 4 * S * S)   # f32 temps + carry
    needed = 2 * per_layer_w_bytes + io_block_bytes + work_bytes
    try:
        vmem_cap = int(pltpu.get_tpu_info().vmem_capacity_bytes)
    except Exception:
        vmem_cap = 64 * 1024 * 1024
    vmem_limit = int(min(max(2 * needed, 32 * 1024 * 1024),
                         int(vmem_cap * 0.8)))

    # ----- Cost estimate (weights streamed once per batch BLOCK) -----
    flops = B * num_layers * (8 * S * D * D + 4 * S * S * D + 4 * S * D * inter)
    transcendentals = B * num_layers * (num_heads * S * S + S * inter + 2 * S)
    weight_bytes_total = sum(int(a.size) * a.dtype.itemsize for a in stacked)
    bytes_accessed = (2 * B * S * D * x.dtype.itemsize
                      + nb * weight_bytes_total)

    out2d = pl.pallas_call(
        kernel,
        out_shape=jax.ShapeDtypeStruct((B * S, D), x.dtype),
        grid_spec=pltpu.PrefetchScalarGridSpec(
            num_scalar_prefetch=0,
            grid=(nb, num_layers),
            in_specs=in_specs,
            out_specs=out_spec,
            scratch_shapes=[
                pltpu.VMEM((Bblk * S, D), jnp.float32),   # activation carry
            ],
        ),
        compiler_params=pltpu.CompilerParams(
            dimension_semantics=("parallel", "arbitrary"),
            vmem_limit_bytes=vmem_limit,
        ),
        cost_estimate=pl.CostEstimate(
            flops=flops, transcendentals=transcendentals,
            bytes_accessed=bytes_accessed),
    )(x2d, *stacked)
    return out2d.reshape(B, S, D)


# ----------------------------------------------------------------------------
# Deterministic parameter initialization (synthetic weights).
# Weights stored as (in_features, out_features): kernel computes x @ W + b,
# numerically identical to nn.Linear whose weight is W^T.
# ----------------------------------------------------------------------------
def init_layer_params(key, hidden, intermediate):
    keys = jax.random.split(key, 10)
    std = 0.02

    def lin(k, din, dout):
        kw, kb = jax.random.split(k)
        return (jax.random.normal(kw, (din, dout), jnp.float32) * std,
                jax.random.normal(kb, (1, dout), jnp.float32) * std)

    wq, bq = lin(keys[0], hidden, hidden)
    wk, bk = lin(keys[1], hidden, hidden)
    wv, bv = lin(keys[2], hidden, hidden)
    wo, bo = lin(keys[3], hidden, hidden)
    w1, b1 = lin(keys[4], hidden, intermediate)
    w2, b2 = lin(keys[5], intermediate, hidden)
    return dict(
        ln1_g=jnp.ones((1, hidden), jnp.float32),
        ln1_b=jnp.zeros((1, hidden), jnp.float32),
        wq=wq, bq=bq, wk=wk, bk=bk, wv=wv, bv=bv, wo=wo, bo=bo,
        ln2_g=jnp.ones((1, hidden), jnp.float32),
        ln2_b=jnp.zeros((1, hidden), jnp.float32),
        w1=w1, b1=b1, w2=w2, b2=b2,
    )


# ----------------------------------------------------------------------------
# Pure-JAX f32 reference (mirrors the PyTorch forward).
# ----------------------------------------------------------------------------
def reference_layer(x, p, *, num_heads, eps=1e-6):
    B, S, D = x.shape
    hd = D // num_heads
    scale = hd ** -0.5

    def ln(v, g, b):
        mu = v.mean(-1, keepdims=True)
        var = ((v - mu) ** 2).mean(-1, keepdims=True)
        return (v - mu) / jnp.sqrt(var + eps) * g + b

    res = x
    h = ln(x, p["ln1_g"], p["ln1_b"])
    q = h @ p["wq"] + p["bq"]
    k = h @ p["wk"] + p["bk"]
    v = h @ p["wv"] + p["bv"]
    q = q.reshape(B, S, num_heads, hd).transpose(0, 2, 1, 3)
    k = k.reshape(B, S, num_heads, hd).transpose(0, 2, 1, 3)
    v = v.reshape(B, S, num_heads, hd).transpose(0, 2, 1, 3)
    scores = jnp.einsum("bhqd,bhkd->bhqk", q, k) * scale
    w = jax.nn.softmax(scores, axis=-1)
    attn = jnp.einsum("bhqk,bhkd->bhqd", w, v).transpose(0, 2, 1, 3).reshape(B, S, D)
    x = res + (attn @ p["wo"] + p["bo"])
    res = x
    h = ln(x, p["ln2_g"], p["ln2_b"])
    h = h @ p["w1"] + p["b1"]
    c = math.sqrt(2.0 / math.pi)
    h = 0.5 * h * (1.0 + jnp.tanh(c * (h + 0.044715 * h ** 3)))
    x = res + (h @ p["w2"] + p["b2"])
    return x


if __name__ == "__main__":
    # Small config consistent with SiglipEncoder's forward:
    #   batch=2, seq=8, hidden=32, heads=4, intermediate=64, layers=2
    B, S, D = 2, 8, 32
    NUM_HEADS = 4
    INTERMEDIATE = 64
    NUM_LAYERS = 2
    EPS = 1e-6

    root = jax.random.PRNGKey(0)
    k_x, *layer_keys = jax.random.split(root, NUM_LAYERS + 1)
    x = jax.random.normal(k_x, (B, S, D), jnp.float32)
    layer_params = [init_layer_params(k, D, INTERMEDIATE) for k in layer_keys]

    # pure-JAX f32 reference
    ref = x
    for p in layer_params:
        ref = reference_layer(ref, p, num_heads=NUM_HEADS, eps=EPS)

    # f32-compute path: tight correctness check (exact softmax reciprocal).
    out_f32 = siglip_encoder(x, layer_params, num_heads=NUM_HEADS, eps=EPS,
                             compute_dtype=jnp.float32)
    out_f32 = jax.block_until_ready(out_f32)
    assert out_f32.shape == (B, S, D)
    assert jnp.allclose(out_f32, ref, atol=2e-3, rtol=2e-3), "f32 mismatch vs reference"

    # bf16 matmul path (production config): looser tolerance for bf16 rounding.
    out_bf16 = siglip_encoder(x, layer_params, num_heads=NUM_HEADS, eps=EPS,
                              compute_dtype=jnp.bfloat16)
    out_bf16 = jax.block_until_ready(out_bf16)
    assert out_bf16.shape == (B, S, D)
    assert jnp.allclose(out_bf16, ref, atol=5e-2, rtol=5e-2), "bf16 mismatch vs reference"

    print("KERNEL_OK")
</pallas_src>

<mosaic_0001>
module attributes {stable_mosaic.version = 11 : i64} {
  func.func @encoder_stack_kernel(%arg0: i32, %arg1: i32, %arg2: memref<16x32xf32, #tpu.memory_space<vmem>>, %arg3: memref<1x32x96xf32, #tpu.memory_space<vmem>>, %arg4: memref<1x1x96xf32, #tpu.memory_space<vmem>>, %arg5: memref<1x32x32xf32, #tpu.memory_space<vmem>>, %arg6: memref<1x32x64xf32, #tpu.memory_space<vmem>>, %arg7: memref<1x1x64xf32, #tpu.memory_space<vmem>>, %arg8: memref<1x64x32xf32, #tpu.memory_space<vmem>>, %arg9: memref<1x6x32xf32, #tpu.memory_space<vmem>>, %arg10: memref<16x32xf32, #tpu.memory_space<vmem>>, %arg11: memref<16x32xf32, #tpu.memory_space<vmem>>) attributes {dimension_semantics = [#tpu.dimension_semantics<parallel>, #tpu.dimension_semantics<arbitrary>], iteration_bounds = array<i64: 1, 2>, scalar_prefetch = 0 : i64, scratch_operands = 1 : i64, tpu.core_type = #tpu.core_type<tc>, window_params = [{transform_indices = @transform_0, window_bounds = array<i64: 16, 32>}, {transform_indices = @transform_1, window_bounds = array<i64: 1, 32, 96>}, {transform_indices = @transform_2, window_bounds = array<i64: 1, 1, 96>}, {transform_indices = @transform_3, window_bounds = array<i64: 1, 32, 32>}, {transform_indices = @transform_4, window_bounds = array<i64: 1, 32, 64>}, {transform_indices = @transform_5, window_bounds = array<i64: 1, 1, 64>}, {transform_indices = @transform_6, window_bounds = array<i64: 1, 64, 32>}, {transform_indices = @transform_7, window_bounds = array<i64: 1, 6, 32>}, {transform_indices = @transform_8, window_bounds = array<i64: 16, 32>}]} {
    %c0_i32 = arith.constant 0 : i32
    %0 = arith.cmpi eq, %arg1, %c0_i32 : i32
    %1 = arith.extui %0 : i1 to i32
    %c0_i32_0 = arith.constant 0 : i32
    %2 = arith.cmpi ne, %1, %c0_i32_0 : i32
    scf.if %2 {
      %c0_90 = arith.constant 0 : index
      %c0_91 = arith.constant 0 : index
      %249 = vector.load %arg2[%c0_90, %c0_91] : memref<16x32xf32, #tpu.memory_space<vmem>>, vector<16x32xf32>
      %c0_92 = arith.constant 0 : index
      %c0_93 = arith.constant 0 : index
      %250 = vector.load %arg11[%c0_92, %c0_93] : memref<16x32xf32, #tpu.memory_space<vmem>>, vector<16x32xf32>
      tpu.vector_store %arg11[%c0_92, %c0_93], %249 {strides = array<i32>} : memref<16x32xf32, #tpu.memory_space<vmem>>, vector<16x32xf32>,
    } else {
    }
    %c0 = arith.constant 0 : index
    %c0_1 = arith.constant 0 : index
    %3 = vector.load %arg11[%c0, %c0_1] : memref<16x32xf32, #tpu.memory_space<vmem>>, vector<16x32xf32>
    %c0_2 = arith.constant 0 : index
    %c0_3 = arith.constant 0 : index
    %c0_4 = arith.constant 0 : index
    %4 = vector.load %arg9[%c0_2, %c0_3, %c0_4] : memref<1x6x32xf32, #tpu.memory_space<vmem>>, vector<1x6x32xf32>
    %5 = vector.shape_cast %4 : vector<1x6x32xf32> to vector<6x32xf32>
    %6 = vector.extract_strided_slice %5 {offsets = [0, 0], sizes = [1, 32], strides = [1, 1]} : vector<6x32xf32> to vector<1x32xf32>
    %7 = vector.extract_strided_slice %5 {offsets = [1, 0], sizes = [1, 32], strides = [1, 1]} : vector<6x32xf32> to vector<1x32xf32>
    %8 = vector.extract_strided_slice %5 {offsets = [2, 0], sizes = [1, 32], strides = [1, 1]} : vector<6x32xf32> to vector<1x32xf32>
    %9 = vector.extract_strided_slice %5 {offsets = [3, 0], sizes = [1, 32], strides = [1, 1]} : vector<6x32xf32> to vector<1x32xf32>
    %10 = vector.extract_strided_slice %5 {offsets = [4, 0], sizes = [1, 32], strides = [1, 1]} : vector<6x32xf32> to vector<1x32xf32>
    %11 = vector.extract_strided_slice %5 {offsets = [5, 0], sizes = [1, 32], strides = [1, 1]} : vector<6x32xf32> to vector<1x32xf32>
    %cst = arith.constant dense<0.000000e+00> : vector<16xf32>
    %12 = vector.multi_reduction <add>, %3, %cst [1] : vector<16x32xf32> to vector<16xf32>
    %13 = vector.shape_cast %12 : vector<16xf32> to vector<16x1xf32>
    %cst_5 = arith.constant 3.200000e+01 : f32
    %14 = vector.broadcast %cst_5 : f32 to vector<16x1xf32>
    %15 = arith.divf %13, %14 : vector<16x1xf32>
    %16 = vector.broadcast %15 : vector<16x1xf32> to vector<16x32xf32>
    %17 = arith.subf %3, %16 : vector<16x32xf32>
    %18 = arith.mulf %17, %17 : vector<16x32xf32>
    %cst_6 = arith.constant dense<0.000000e+00> : vector<16xf32>
    %19 = vector.multi_reduction <add>, %18, %cst_6 [1] : vector<16x32xf32> to vector<16xf32>
    %20 = vector.shape_cast %19 : vector<16xf32> to vector<16x1xf32>
    %cst_7 = arith.constant 3.200000e+01 : f32
    %21 = vector.broadcast %cst_7 : f32 to vector<16x1xf32>
    %22 = arith.divf %20, %21 : vector<16x1xf32>
    %23 = vector.broadcast %15 : vector<16x1xf32> to vector<16x32xf32>
    %24 = arith.subf %3, %23 : vector<16x32xf32>
    %cst_8 = arith.constant 9.99999997E-7 : f32
    %25 = vector.broadcast %cst_8 : f32 to vector<16x1xf32>
    %26 = arith.addf %22, %25 : vector<16x1xf32>
    %27 = math.rsqrt %26 : vector<16x1xf32>
    %28 = vector.broadcast %27 : vector<16x1xf32> to vector<16x32xf32>
    %29 = arith.mulf %24, %28 : vector<16x32xf32>
    %30 = vector.broadcast %6 : vector<1x32xf32> to vector<16x32xf32>
    %31 = arith.mulf %29, %30 : vector<16x32xf32>
    %32 = vector.broadcast %7 : vector<1x32xf32> to vector<16x32xf32>
    %33 = arith.addf %31, %32 : vector<16x32xf32>
    %c0_9 = arith.constant 0 : index
    %c0_10 = arith.constant 0 : index
    %c0_11 = arith.constant 0 : index
    %34 = vector.load %arg3[%c0_9, %c0_10, %c0_11] : memref<1x32x96xf32, #tpu.memory_space<vmem>>, vector<1x32x96xf32>
    %35 = vector.shape_cast %34 : vector<1x32x96xf32> to vector<32x96xf32>
    %cst_12 = arith.constant dense<0.000000e+00> : vector<16x96xf32>
    %36 = tpu.matmul %33, %35, %cst_12 {dimension_numbers = #tpu.dot_dimension_numbers<[1], [0], [0], [1], [0, 0, 1, 1], [], []>} : vector<16x32xf32>, vector<32x96xf32>, vector<16x96xf32> -> vector<16x96xf32>
    %c0_13 = arith.constant 0 : index
    %c0_14 = arith.constant 0 : index
    %c0_15 = arith.constant 0 : index
    %37 = vector.load %arg4[%c0_13, %c0_14, %c0_15] : memref<1x1x96xf32, #tpu.memory_space<vmem>>, vector<1x1x96xf32>
    %38 = vector.shape_cast %37 : vector<1x1x96xf32> to vector<1x96xf32>
    %39 = vector.broadcast %38 : vector<1x96xf32> to vector<16x96xf32>
    %40 = arith.addf %36, %39 : vector<16x96xf32>
    %c0_16 = arith.constant 0 : index
    %c0_17 = arith.constant 0 : index
    %c0_18 = arith.constant 0 : index
    %41 = vector.load %arg5[%c0_16, %c0_17, %c0_18] : memref<1x32x32xf32, #tpu.memory_space<vmem>>, vector<1x32x32xf32>
    %42 = vector.shape_cast %41 : vector<1x32x32xf32> to vector<32x32xf32>
    %43 = vector.extract_strided_slice %40 {offsets = [0, 0], sizes = [8, 8], strides = [1, 1]} : vector<16x96xf32> to vector<8x8xf32>
    %44 = vector.extract_strided_slice %40 {offsets = [0, 32], sizes = [8, 8], strides = [1, 1]} : vector<16x96xf32> to vector<8x8xf32>
    %45 = vector.extract_strided_slice %40 {offsets = [0, 64], sizes = [8, 8], strides = [1, 1]} : vector<16x96xf32> to vector<8x8xf32>
    %cst_19 = arith.constant dense<0.000000e+00> : vector<8x8xf32>
    %46 = tpu.matmul %43, %44, %cst_19 {dimension_numbers = #tpu.dot_dimension_numbers<[1], [1], [0], [0], [0, 0, 1, 0], [], []>} : vector<8x8xf32>, vector<8x8xf32>, vector<8x8xf32> -> vector<8x8xf32>
    %cst_20 = arith.constant 0.353553385 : f32
    %47 = vector.broadcast %cst_20 : f32 to vector<8x8xf32>
    %48 = arith.mulf %46, %47 : vector<8x8xf32>
    %cst_21 = arith.constant dense<0xFF800000> : vector<8xf32>
    %49 = vector.multi_reduction <maximumf>, %48, %cst_21 [1] : vector<8x8xf32> to vector<8xf32>
    %50 = vector.shape_cast %49 : vector<8xf32> to vector<8x1xf32>
    %51 = vector.broadcast %50 : vector<8x1xf32> to vector<8x8xf32>
    %52 = arith.subf %48, %51 : vector<8x8xf32>
    %53 = math.exp %52 : vector<8x8xf32>
    %cst_22 = arith.constant dense<0.000000e+00> : vector<8xf32>
    %54 = vector.multi_reduction <add>, %53, %cst_22 [1] : vector<8x8xf32> to vector<8xf32>
    %55 = vector.shape_cast %54 : vector<8xf32> to vector<8x1xf32>
    %56 = vector.broadcast %55 : vector<8x1xf32> to vector<8x8xf32>
    %57 = arith.divf %53, %56 : vector<8x8xf32>
    %cst_23 = arith.constant dense<0.000000e+00> : vector<8x8xf32>
    %58 = tpu.matmul %57, %45, %cst_23 {dimension_numbers = #tpu.dot_dimension_numbers<[1], [0], [0], [1], [0, 0, 1, 1], [], []>} : vector<8x8xf32>, vector<8x8xf32>, vector<8x8xf32> -> vector<8x8xf32>
    %59 = vector.extract_strided_slice %42 {offsets = [0, 0], sizes = [8, 32], strides = [1, 1]} : vector<32x32xf32> to vector<8x32xf32>
    %cst_24 = arith.constant dense<0.000000e+00> : vector<8x32xf32>
    %60 = tpu.matmul %58, %59, %cst_24 {dimension_numbers = #tpu.dot_dimension_numbers<[1], [0], [0], [1], [0, 0, 1, 1], [], []>} : vector<8x8xf32>, vector<8x32xf32>, vector<8x32xf32> -> vector<8x32xf32>
    %61 = vector.extract_strided_slice %40 {offsets = [0, 8], sizes = [8, 8], strides = [1, 1]} : vector<16x96xf32> to vector<8x8xf32>
    %62 = vector.extract_strided_slice %40 {offsets = [0, 40], sizes = [8, 8], strides = [1, 1]} : vector<16x96xf32> to vector<8x8xf32>
    %63 = vector.extract_strided_slice %40 {offsets = [0, 72], sizes = [8, 8], strides = [1, 1]} : vector<16x96xf32> to vector<8x8xf32>
    %cst_25 = arith.constant dense<0.000000e+00> : vector<8x8xf32>
    %64 = tpu.matmul %61, %62, %cst_25 {dimension_numbers = #tpu.dot_dimension_numbers<[1], [1], [0], [0], [0, 0, 1, 0], [], []>} : vector<8x8xf32>, vector<8x8xf32>, vector<8x8xf32> -> vector<8x8xf32>
    %cst_26 = arith.constant 0.353553385 : f32
    %65 = vector.broadcast %cst_26 : f32 to vector<8x8xf32>
    %66 = arith.mulf %64, %65 : vector<8x8xf32>
    %cst_27 = arith.constant dense<0xFF800000> : vector<8xf32>
    %67 = vector.multi_reduction <maximumf>, %66, %cst_27 [1] : vector<8x8xf32> to vector<8xf32>
    %68 = vector.shape_cast %67 : vector<8xf32> to vector<8x1xf32>
    %69 = vector.broadcast %68 : vector<8x1xf32> to vector<8x8xf32>
    %70 = arith.subf %66, %69 : vector<8x8xf32>
    %71 = math.exp %70 : vector<8x8xf32>
    %cst_28 = arith.constant dense<0.000000e+00> : vector<8xf32>
    %72 = vector.multi_reduction <add>, %71, %cst_28 [1] : vector<8x8xf32> to vector<8xf32>
    %73 = vector.shape_cast %72 : vector<8xf32> to vector<8x1xf32>
    %74 = vector.broadcast %73 : vector<8x1xf32> to vector<8x8xf32>
    %75 = arith.divf %71, %74 : vector<8x8xf32>
    %cst_29 = arith.constant dense<0.000000e+00> : vector<8x8xf32>
    %76 = tpu.matmul %75, %63, %cst_29 {dimension_numbers = #tpu.dot_dimension_numbers<[1], [0], [0], [1], [0, 0, 1, 1], [], []>} : vector<8x8xf32>, vector<8x8xf32>, vector<8x8xf32> -> vector<8x8xf32>
    %77 = vector.extract_strided_slice %42 {offsets = [8, 0], sizes = [8, 32], strides = [1, 1]} : vector<32x32xf32> to vector<8x32xf32>
    %cst_30 = arith.constant dense<0.000000e+00> : vector<8x32xf32>
    %78 = tpu.matmul %76, %77, %cst_30 {dimension_numbers = #tpu.dot_dimension_numbers<[1], [0], [0], [1], [0, 0, 1, 1], [], []>} : vector<8x8xf32>, vector<8x32xf32>, vector<8x32xf32> -> vector<8x32xf32>
    %79 = arith.addf %60, %78 : vector<8x32xf32>
    %80 = vector.extract_strided_slice %40 {offsets = [0, 16], sizes = [8, 8], strides = [1, 1]} : vector<16x96xf32> to vector<8x8xf32>
    %81 = vector.extract_strided_slice %40 {offsets = [0, 48], sizes = [8, 8], strides = [1, 1]} : vector<16x96xf32> to vector<8x8xf32>
    %82 = vector.extract_strided_slice %40 {offsets = [0, 80], sizes = [8, 8], strides = [1, 1]} : vector<16x96xf32> to vector<8x8xf32>
    %cst_31 = arith.constant dense<0.000000e+00> : vector<8x8xf32>
    %83 = tpu.matmul %80, %81, %cst_31 {dimension_numbers = #tpu.dot_dimension_numbers<[1], [1], [0], [0], [0, 0, 1, 0], [], []>} : vector<8x8xf32>, vector<8x8xf32>, vector<8x8xf32> -> vector<8x8xf32>
    %cst_32 = arith.constant 0.353553385 : f32
    %84 = vector.broadcast %cst_32 : f32 to vector<8x8xf32>
    %85 = arith.mulf %83, %84 : vector<8x8xf32>
    %cst_33 = arith.constant dense<0xFF800000> : vector<8xf32>
    %86 = vector.multi_reduction <maximumf>, %85, %cst_33 [1] : vector<8x8xf32> to vector<8xf32>
    %87 = vector.shape_cast %86 : vector<8xf32> to vector<8x1xf32>
    %88 = vector.broadcast %87 : vector<8x1xf32> to vector<8x8xf32>
    %89 = arith.subf %85, %88 : vector<8x8xf32>
    %90 = math.exp %89 : vector<8x8xf32>
    %cst_34 = arith.constant dense<0.000000e+00> : vector<8xf32>
    %91 = vector.multi_reduction <add>, %90, %cst_34 [1] : vector<8x8xf32> to vector<8xf32>
    %92 = vector.shape_cast %91 : vector<8xf32> to vector<8x1xf32>
    %93 = vector.broadcast %92 : vector<8x1xf32> to vector<8x8xf32>
    %94 = arith.divf %90, %93 : vector<8x8xf32>
    %cst_35 = arith.constant dense<0.000000e+00> : vector<8x8xf32>
    %95 = tpu.matmul %94, %82, %cst_35 {dimension_numbers = #tpu.dot_dimension_numbers<[1], [0], [0], [1], [0, 0, 1, 1], [], []>} : vector<8x8xf32>, vector<8x8xf32>, vector<8x8xf32> -> vector<8x8xf32>
    %96 = vector.extract_strided_slice %42 {offsets = [16, 0], sizes = [8, 32], strides = [1, 1]} : vector<32x32xf32> to vector<8x32xf32>
    %cst_36 = arith.constant dense<0.000000e+00> : vector<8x32xf32>
    %97 = tpu.matmul %95, %96, %cst_36 {dimension_numbers = #tpu.dot_dimension_numbers<[1], [0], [0], [1], [0, 0, 1, 1], [], []>} : vector<8x8xf32>, vector<8x32xf32>, vector<8x32xf32> -> vector<8x32xf32>
    %98 = arith.addf %79, %97 : vector<8x32xf32>
    %99 = vector.extract_strided_slice %40 {offsets = [0, 24], sizes = [8, 8], strides = [1, 1]} : vector<16x96xf32> to vector<8x8xf32>
    %100 = vector.extract_strided_slice %40 {offsets = [0, 56], sizes = [8, 8], strides = [1, 1]} : vector<16x96xf32> to vector<8x8xf32>
    %101 = vector.extract_strided_slice %40 {offsets = [0, 88], sizes = [8, 8], strides = [1, 1]} : vector<16x96xf32> to vector<8x8xf32>
    %cst_37 = arith.constant dense<0.000000e+00> : vector<8x8xf32>
    %102 = tpu.matmul %99, %100, %cst_37 {dimension_numbers = #tpu.dot_dimension_numbers<[1], [1], [0], [0], [0, 0, 1, 0], [], []>} : vector<8x8xf32>, vector<8x8xf32>, vector<8x8xf32> -> vector<8x8xf32>
    %cst_38 = arith.constant 0.353553385 : f32
    %103 = vector.broadcast %cst_38 : f32 to vector<8x8xf32>
    %104 = arith.mulf %102, %103 : vector<8x8xf32>
    %cst_39 = arith.constant dense<0xFF800000> : vector<8xf32>
    %105 = vector.multi_reduction <maximumf>, %104, %cst_39 [1] : vector<8x8xf32> to vector<8xf32>
    %106 = vector.shape_cast %105 : vector<8xf32> to vector<8x1xf32>
    %107 = vector.broadcast %106 : vector<8x1xf32> to vector<8x8xf32>
    %108 = arith.subf %104, %107 : vector<8x8xf32>
    %109 = math.exp %108 : vector<8x8xf32>
    %cst_40 = arith.constant dense<0.000000e+00> : vector<8xf32>
    %110 = vector.multi_reduction <add>, %109, %cst_40 [1] : vector<8x8xf32> to vector<8xf32>
    %111 = vector.shape_cast %110 : vector<8xf32> to vector<8x1xf32>
    %112 = vector.broadcast %111 : vector<8x1xf32> to vector<8x8xf32>
    %113 = arith.divf %109, %112 : vector<8x8xf32>
    %cst_41 = arith.constant dense<0.000000e+00> : vector<8x8xf32>
    %114 = tpu.matmul %113, %101, %cst_41 {dimension_numbers = #tpu.dot_dimension_numbers<[1], [0], [0], [1], [0, 0, 1, 1], [], []>} : vector<8x8xf32>, vector<8x8xf32>, vector<8x8xf32> -> vector<8x8xf32>
    %115 = vector.extract_strided_slice %42 {offsets = [24, 0], sizes = [8, 32], strides = [1, 1]} : vector<32x32xf32> to vector<8x32xf32>
    %cst_42 = arith.constant dense<0.000000e+00> : vector<8x32xf32>
    %116 = tpu.matmul %114, %115, %cst_42 {dimension_numbers = #tpu.dot_dimension_numbers<[1], [0], [0], [1], [0, 0, 1, 1], [], []>} : vector<8x8xf32>, vector<8x32xf32>, vector<8x32xf32> -> vector<8x32xf32>
    %117 = arith.addf %98, %116 : vector<8x32xf32>
    %118 = vector.extract_strided_slice %40 {offsets = [8, 0], sizes = [8, 8], strides = [1, 1]} : vector<16x96xf32> to vector<8x8xf32>
    %119 = vector.extract_strided_slice %40 {offsets = [8, 32], sizes = [8, 8], strides = [1, 1]} : vector<16x96xf32> to vector<8x8xf32>
    %120 = vector.extract_strided_slice %40 {offsets = [8, 64], sizes = [8, 8], strides = [1, 1]} : vector<16x96xf32> to vector<8x8xf32>
    %cst_43 = arith.constant dense<0.000000e+00> : vector<8x8xf32>
    %121 = tpu.matmul %118, %119, %cst_43 {dimension_numbers = #tpu.dot_dimension_numbers<[1], [1], [0], [0], [0, 0, 1, 0], [], []>} : vector<8x8xf32>, vector<8x8xf32>, vector<8x8xf32> -> vector<8x8xf32>
    %cst_44 = arith.constant 0.353553385 : f32
    %122 = vector.broadcast %cst_44 : f32 to vector<8x8xf32>
    %123 = arith.mulf %121, %122 : vector<8x8xf32>
    %cst_45 = arith.constant dense<0xFF800000> : vector<8xf32>
    %124 = vector.multi_reduction <maximumf>, %123, %cst_45 [1] : vector<8x8xf32> to vector<8xf32>
    %125 = vector.shape_cast %124 : vector<8xf32> to vector<8x1xf32>
    %126 = vector.broadcast %125 : vector<8x1xf32> to vector<8x8xf32>
    %127 = arith.subf %123, %126 : vector<8x8xf32>
    %128 = math.exp %127 : vector<8x8xf32>
    %cst_46 = arith.constant dense<0.000000e+00> : vector<8xf32>
    %129 = vector.multi_reduction <add>, %128, %cst_46 [1] : vector<8x8xf32> to vector<8xf32>
    %130 = vector.shape_cast %129 : vector<8xf32> to vector<8x1xf32>
    %131 = vector.broadcast %130 : vector<8x1xf32> to vector<8x8xf32>
    %132 = arith.divf %128, %131 : vector<8x8xf32>
    %cst_47 = arith.constant dense<0.000000e+00> : vector<8x8xf32>
    %133 = tpu.matmul %132, %120, %cst_47 {dimension_numbers = #tpu.dot_dimension_numbers<[1], [0], [0], [1], [0, 0, 1, 1], [], []>} : vector<8x8xf32>, vector<8x8xf32>, vector<8x8xf32> -> vector<8x8xf32>
    %134 = vector.extract_strided_slice %42 {offsets = [0, 0], sizes = [8, 32], strides = [1, 1]} : vector<32x32xf32> to vector<8x32xf32>
    %cst_48 = arith.constant dense<0.000000e+00> : vector<8x32xf32>
    %135 = tpu.matmul %133, %134, %cst_48 {dimension_numbers = #tpu.dot_dimension_numbers<[1], [0], [0], [1], [0, 0, 1, 1], [], []>} : vector<8x8xf32>, vector<8x32xf32>, vector<8x32xf32> -> vector<8x32xf32>
    %136 = vector.extract_strided_slice %40 {offsets = [8, 8], sizes = [8, 8], strides = [1, 1]} : vector<16x96xf32> to vector<8x8xf32>
    %137 = vector.extract_strided_slice %40 {offsets = [8, 40], sizes = [8, 8], strides = [1, 1]} : vector<16x96xf32> to vector<8x8xf32>
    %138 = vector.extract_strided_slice %40 {offsets = [8, 72], sizes = [8, 8], strides = [1, 1]} : vector<16x96xf32> to vector<8x8xf32>
    %cst_49 = arith.constant dense<0.000000e+00> : vector<8x8xf32>
    %139 = tpu.matmul %136, %137, %cst_49 {dimension_numbers = #tpu.dot_dimension_numbers<[1], [1], [0], [0], [0, 0, 1, 0], [], []>} : vector<8x8xf32>, vector<8x8xf32>, vector<8x8xf32> -> vector<8x8xf32>
    %cst_50 = arith.constant 0.353553385 : f32
    %140 = vector.broadcast %cst_50 : f32 to vector<8x8xf32>
    %141 = arith.mulf %139, %140 : vector<8x8xf32>
    %cst_51 = arith.constant dense<0xFF800000> : vector<8xf32>
    %142 = vector.multi_reduction <maximumf>, %141, %cst_51 [1] : vector<8x8xf32> to vector<8xf32>
    %143 = vector.shape_cast %142 : vector<8xf32> to vector<8x1xf32>
    %144 = vector.broadcast %143 : vector<8x1xf32> to vector<8x8xf32>
    %145 = arith.subf %141, %144 : vector<8x8xf32>
    %146 = math.exp %145 : vector<8x8xf32>
    %cst_52 = arith.constant dense<0.000000e+00> : vector<8xf32>
    %147 = vector.multi_reduction <add>, %146, %cst_52 [1] : vector<8x8xf32> to vector<8xf32>
    %148 = vector.shape_cast %147 : vector<8xf32> to vector<8x1xf32>
    %149 = vector.broadcast %148 : vector<8x1xf32> to vector<8x8xf32>
    %150 = arith.divf %146, %149 : vector<8x8xf32>
    %cst_53 = arith.constant dense<0.000000e+00> : vector<8x8xf32>
    %151 = tpu.matmul %150, %138, %cst_53 {dimension_numbers = #tpu.dot_dimension_numbers<[1], [0], [0], [1], [0, 0, 1, 1], [], []>} : vector<8x8xf32>, vector<8x8xf32>, vector<8x8xf32> -> vector<8x8xf32>
    %152 = vector.extract_strided_slice %42 {offsets = [8, 0], sizes = [8, 32], strides = [1, 1]} : vector<32x32xf32> to vector<8x32xf32>
    %cst_54 = arith.constant dense<0.000000e+00> : vector<8x32xf32>
    %153 = tpu.matmul %151, %152, %cst_54 {dimension_numbers = #tpu.dot_dimension_numbers<[1], [0], [0], [1], [0, 0, 1, 1], [], []>} : vector<8x8xf32>, vector<8x32xf32>, vector<8x32xf32> -> vector<8x32xf32>
    %154 = arith.addf %135, %153 : vector<8x32xf32>
    %155 = vector.extract_strided_slice %40 {offsets = [8, 16], sizes = [8, 8], strides = [1, 1]} : vector<16x96xf32> to vector<8x8xf32>
    %156 = vector.extract_strided_slice %40 {offsets = [8, 48], sizes = [8, 8], strides = [1, 1]} : vector<16x96xf32> to vector<8x8xf32>
    %157 = vector.extract_strided_slice %40 {offsets = [8, 80], sizes = [8, 8], strides = [1, 1]} : vector<16x96xf32> to vector<8x8xf32>
    %cst_55 = arith.constant dense<0.000000e+00> : vector<8x8xf32>
    %158 = tpu.matmul %155, %156, %cst_55 {dimension_numbers = #tpu.dot_dimension_numbers<[1], [1], [0], [0], [0, 0, 1, 0], [], []>} : vector<8x8xf32>, vector<8x8xf32>, vector<8x8xf32> -> vector<8x8xf32>
    %cst_56 = arith.constant 0.353553385 : f32
    %159 = vector.broadcast %cst_56 : f32 to vector<8x8xf32>
    %160 = arith.mulf %158, %159 : vector<8x8xf32>
    %cst_57 = arith.constant dense<0xFF800000> : vector<8xf32>
    %161 = vector.multi_reduction <maximumf>, %160, %cst_57 [1] : vector<8x8xf32> to vector<8xf32>
    %162 = vector.shape_cast %161 : vector<8xf32> to vector<8x1xf32>
    %163 = vector.broadcast %162 : vector<8x1xf32> to vector<8x8xf32>
    %164 = arith.subf %160, %163 : vector<8x8xf32>
    %165 = math.exp %164 : vector<8x8xf32>
    %cst_58 = arith.constant dense<0.000000e+00> : vector<8xf32>
    %166 = vector.multi_reduction <add>, %165, %cst_58 [1] : vector<8x8xf32> to vector<8xf32>
    %167 = vector.shape_cast %166 : vector<8xf32> to vector<8x1xf32>
    %168 = vector.broadcast %167 : vector<8x1xf32> to vector<8x8xf32>
    %169 = arith.divf %165, %168 : vector<8x8xf32>
    %cst_59 = arith.constant dense<0.000000e+00> : vector<8x8xf32>
    %170 = tpu.matmul %169, %157, %cst_59 {dimension_numbers = #tpu.dot_dimension_numbers<[1], [0], [0], [1], [0, 0, 1, 1], [], []>} : vector<8x8xf32>, vector<8x8xf32>, vector<8x8xf32> -> vector<8x8xf32>
    %171 = vector.extract_strided_slice %42 {offsets = [16, 0], sizes = [8, 32], strides = [1, 1]} : vector<32x32xf32> to vector<8x32xf32>
    %cst_60 = arith.constant dense<0.000000e+00> : vector<8x32xf32>
    %172 = tpu.matmul %170, %171, %cst_60 {dimension_numbers = #tpu.dot_dimension_numbers<[1], [0], [0], [1], [0, 0, 1, 1], [], []>} : vector<8x8xf32>, vector<8x32xf32>, vector<8x32xf32> -> vector<8x32xf32>
    %173 = arith.addf %154, %172 : vector<8x32xf32>
    %174 = vector.extract_strided_slice %40 {offsets = [8, 24], sizes = [8, 8], strides = [1, 1]} : vector<16x96xf32> to vector<8x8xf32>
    %175 = vector.extract_strided_slice %40 {offsets = [8, 56], sizes = [8, 8], strides = [1, 1]} : vector<16x96xf32> to vector<8x8xf32>
    %176 = vector.extract_strided_slice %40 {offsets = [8, 88], sizes = [8, 8], strides = [1, 1]} : vector<16x96xf32> to vector<8x8xf32>
    %cst_61 = arith.constant dense<0.000000e+00> : vector<8x8xf32>
    %177 = tpu.matmul %174, %175, %cst_61 {dimension_numbers = #tpu.dot_dimension_numbers<[1], [1], [0], [0], [0, 0, 1, 0], [], []>} : vector<8x8xf32>, vector<8x8xf32>, vector<8x8xf32> -> vector<8x8xf32>
    %cst_62 = arith.constant 0.353553385 : f32
    %178 = vector.broadcast %cst_62 : f32 to vector<8x8xf32>
    %179 = arith.mulf %177, %178 : vector<8x8xf32>
    %cst_63 = arith.constant dense<0xFF800000> : vector<8xf32>
    %180 = vector.multi_reduction <maximumf>, %179, %cst_63 [1] : vector<8x8xf32> to vector<8xf32>
    %181 = vector.shape_cast %180 : vector<8xf32> to vector<8x1xf32>
    %182 = vector.broadcast %181 : vector<8x1xf32> to vector<8x8xf32>
    %183 = arith.subf %179, %182 : vector<8x8xf32>
    %184 = math.exp %183 : vector<8x8xf32>
    %cst_64 = arith.constant dense<0.000000e+00> : vector<8xf32>
    %185 = vector.multi_reduction <add>, %184, %cst_64 [1] : vector<8x8xf32> to vector<8xf32>
    %186 = vector.shape_cast %185 : vector<8xf32> to vector<8x1xf32>
    %187 = vector.broadcast %186 : vector<8x1xf32> to vector<8x8xf32>
    %188 = arith.divf %184, %187 : vector<8x8xf32>
    %cst_65 = arith.constant dense<0.000000e+00> : vector<8x8xf32>
    %189 = tpu.matmul %188, %176, %cst_65 {dimension_numbers = #tpu.dot_dimension_numbers<[1], [0], [0], [1], [0, 0, 1, 1], [], []>} : vector<8x8xf32>, vector<8x8xf32>, vector<8x8xf32> -> vector<8x8xf32>
    %190 = vector.extract_strided_slice %42 {offsets = [24, 0], sizes = [8, 32], strides = [1, 1]} : vector<32x32xf32> to vector<8x32xf32>
    %cst_66 = arith.constant dense<0.000000e+00> : vector<8x32xf32>
    %191 = tpu.matmul %189, %190, %cst_66 {dimension_numbers = #tpu.dot_dimension_numbers<[1], [0], [0], [1], [0, 0, 1, 1], [], []>} : vector<8x8xf32>, vector<8x32xf32>, vector<8x32xf32> -> vector<8x32xf32>
    %192 = arith.addf %173, %191 : vector<8x32xf32>
    %193 = tpu.concatenate %117, %192 in 0 : vector<8x32xf32>, vector<8x32xf32> -> vector<16x32xf32>
    %194 = arith.addf %3, %193 : vector<16x32xf32>
    %195 = vector.broadcast %10 : vector<1x32xf32> to vector<16x32xf32>
    %196 = arith.addf %194, %195 : vector<16x32xf32>
    %cst_67 = arith.constant dense<0.000000e+00> : vector<16xf32>
    %197 = vector.multi_reduction <add>, %196, %cst_67 [1] : vector<16x32xf32> to vector<16xf32>
    %198 = vector.shape_cast %197 : vector<16xf32> to vector<16x1xf32>
    %cst_68 = arith.constant 3.200000e+01 : f32
    %199 = vector.broadcast %cst_68 : f32 to vector<16x1xf32>
    %200 = arith.divf %198, %199 : vector<16x1xf32>
    %201 = vector.broadcast %200 : vector<16x1xf32> to vector<16x32xf32>
    %202 = arith.subf %196, %201 : vector<16x32xf32>
    %203 = arith.mulf %202, %202 : vector<16x32xf32>
    %cst_69 = arith.constant dense<0.000000e+00> : vector<16xf32>
    %204 = vector.multi_reduction <add>, %203, %cst_69 [1] : vector<16x32xf32> to vector<16xf32>
    %205 = vector.shape_cast %204 : vector<16xf32> to vector<16x1xf32>
    %cst_70 = arith.constant 3.200000e+01 : f32
    %206 = vector.broadcast %cst_70 : f32 to vector<16x1xf32>
    %207 = arith.divf %205, %206 : vector<16x1xf32>
    %208 = vector.broadcast %200 : vector<16x1xf32> to vector<16x32xf32>
    %209 = arith.subf %196, %208 : vector<16x32xf32>
    %cst_71 = arith.constant 9.99999997E-7 : f32
    %210 = vector.broadcast %cst_71 : f32 to vector<16x1xf32>
    %211 = arith.addf %207, %210 : vector<16x1xf32>
    %212 = math.rsqrt %211 : vector<16x1xf32>
    %213 = vector.broadcast %212 : vector<16x1xf32> to vector<16x32xf32>
    %214 = arith.mulf %209, %213 : vector<16x32xf32>
    %215 = vector.broadcast %8 : vector<1x32xf32> to vector<16x32xf32>
    %216 = arith.mulf %214, %215 : vector<16x32xf32>
    %217 = vector.broadcast %9 : vector<1x32xf32> to vector<16x32xf32>
    %218 = arith.addf %216, %217 : vector<16x32xf32>
    %c0_72 = arith.constant 0 : index
    %c0_73 = arith.constant 0 : index
    %c0_74 = arith.constant 0 : index
    %219 = vector.load %arg6[%c0_72, %c0_73, %c0_74] : memref<1x32x64xf32, #tpu.memory_space<vmem>>, vector<1x32x64xf32>
    %220 = vector.shape_cast %219 : vector<1x32x64xf32> to vector<32x64xf32>
    %cst_75 = arith.constant dense<0.000000e+00> : vector<16x64xf32>
    %221 = tpu.matmul %218, %220, %cst_75 {dimension_numbers = #tpu.dot_dimension_numbers<[1], [0], [0], [1], [0, 0, 1, 1], [], []>} : vector<16x32xf32>, vector<32x64xf32>, vector<16x64xf32> -> vector<16x64xf32>
    %c0_76 = arith.constant 0 : index
    %c0_77 = arith.constant 0 : index
    %c0_78 = arith.constant 0 : index
    %222 = vector.load %arg7[%c0_76, %c0_77, %c0_78] : memref<1x1x64xf32, #tpu.memory_space<vmem>>, vector<1x1x64xf32>
    %223 = vector.shape_cast %222 : vector<1x1x64xf32> to vector<1x64xf32>
    %224 = vector.broadcast %223 : vector<1x64xf32> to vector<16x64xf32>
    %225 = arith.addf %221, %224 : vector<16x64xf32>
    %cst_79 = arith.constant 5.000000e-01 : f32
    %226 = vector.broadcast %cst_79 : f32 to vector<16x64xf32>
    %227 = arith.mulf %226, %225 : vector<16x64xf32>
    %228 = arith.mulf %225, %225 : vector<16x64xf32>
    %229 = arith.mulf %225, %228 : vector<16x64xf32>
    %cst_80 = arith.constant 4.471500e-02 : f32
    %230 = vector.broadcast %cst_80 : f32 to vector<16x64xf32>
    %231 = arith.mulf %230, %229 : vector<16x64xf32>
    %232 = arith.addf %225, %231 : vector<16x64xf32>
    %cst_81 = arith.constant 0.797884583 : f32
    %233 = vector.broadcast %cst_81 : f32 to vector<16x64xf32>
    %234 = arith.mulf %233, %232 : vector<16x64xf32>
    %235 = math.tanh %234 : vector<16x64xf32>
    %cst_82 = arith.constant 1.000000e+00 : f32
    %236 = vector.broadcast %cst_82 : f32 to vector<16x64xf32>
    %237 = arith.addf %236, %235 : vector<16x64xf32>
    %238 = arith.mulf %227, %237 : vector<16x64xf32>
    %c0_83 = arith.constant 0 : index
    %c0_84 = arith.constant 0 : index
    %c0_85 = arith.constant 0 : index
    %239 = vector.load %arg8[%c0_83, %c0_84, %c0_85] : memref<1x64x32xf32, #tpu.memory_space<vmem>>, vector<1x64x32xf32>
    %240 = vector.shape_cast %239 : vector<1x64x32xf32> to vector<64x32xf32>
    %cst_86 = arith.constant dense<0.000000e+00> : vector<16x32xf32>
    %241 = tpu.matmul %238, %240, %cst_86 {dimension_numbers = #tpu.dot_dimension_numbers<[1], [0], [0], [1], [0, 0, 1, 1], [], []>} : vector<16x64xf32>, vector<64x32xf32>, vector<16x32xf32> -> vector<16x32xf32>
    %242 = vector.broadcast %11 : vector<1x32xf32> to vector<16x32xf32>
    %243 = arith.addf %241, %242 : vector<16x32xf32>
    %244 = arith.addf %196, %243 : vector<16x32xf32>
    %c0_87 = arith.constant 0 : index
    %c0_88 = arith.constant 0 : index
    %245 = vector.load %arg11[%c0_87, %c0_88] : memref<16x32xf32, #tpu.memory_space<vmem>>, vector<16x32xf32>
    tpu.vector_store %arg11[%c0_87, %c0_88], %244 {strides = array<i32>} : memref<16x32xf32, #tpu.memory_space<vmem>>, vector<16x32xf32>,
    %c1_i32 = arith.constant 1 : i32
    %246 = arith.cmpi eq, %arg1, %c1_i32 : i32
    %247 = arith.extui %246 : i1 to i32
    %c0_i32_89 = arith.constant 0 : i32
    %248 = arith.cmpi ne, %247, %c0_i32_89 : i32
    scf.if %248 {
      %c0_90 = arith.constant 0 : index
      %c0_91 = arith.constant 0 : index
      %249 = vector.load %arg11[%c0_90, %c0_91] : memref<16x32xf32, #tpu.memory_space<vmem>>, vector<16x32xf32>
      %c0_92 = arith.constant 0 : index
      %c0_93 = arith.constant 0 : index
      %250 = vector.load %arg10[%c0_92, %c0_93] : memref<16x32xf32, #tpu.memory_space<vmem>>, vector<16x32xf32>
      tpu.vector_store %arg10[%c0_92, %c0_93], %249 {strides = array<i32>} : memref<16x32xf32, #tpu.memory_space<vmem>>, vector<16x32xf32>,
    } else {
    }
    return
  }
  func.func @transform_0(%arg0: i32, %arg1: i32) -> (i32, i32) {
    %c0_i32 = arith.constant 0 : i32
    %c0_i32_0 = arith.constant 0 : i32
    return %arg0, %c0_i32 : i32, i32
  }
  func.func @transform_1(%arg0: i32, %arg1: i32) -> (i32, i32, i32) {
    %c0_i32 = arith.constant 0 : i32
    %c0_i32_0 = arith.constant 0 : i32
    %c0_i32_1 = arith.constant 0 : i32
    return %arg1, %c0_i32, %c0_i32_0 : i32, i32, i32
  }
  func.func @transform_2(%arg0: i32, %arg1: i32) -> (i32, i32, i32) {
    %c0_i32 = arith.constant 0 : i32
    %c0_i32_0 = arith.constant 0 : i32
    %c0_i32_1 = arith.constant 0 : i32
    return %arg1, %c0_i32, %c0_i32_0 : i32, i32, i32
  }
  func.func @transform_3(%arg0: i32, %arg1: i32) -> (i32, i32, i32) {
    %c0_i32 = arith.constant 0 : i32
    %c0_i32_0 = arith.constant 0 : i32
    %c0_i32_1 = arith.constant 0 : i32
    return %arg1, %c0_i32, %c0_i32_0 : i32, i32, i32
  }
  func.func @transform_4(%arg0: i32, %arg1: i32) -> (i32, i32, i32) {
    %c0_i32 = arith.constant 0 : i32
    %c0_i32_0 = arith.constant 0 : i32
    %c0_i32_1 = arith.constant 0 : i32
    return %arg1, %c0_i32, %c0_i32_0 : i32, i32, i32
  }
  func.func @transform_5(%arg0: i32, %arg1: i32) -> (i32, i32, i32) {
    %c0_i32 = arith.constant 0 : i32
    %c0_i32_0 = arith.constant 0 : i32
    %c0_i32_1 = arith.constant 0 : i32
    return %arg1, %c0_i32, %c0_i32_0 : i32, i32, i32
  }
  func.func @transform_6(%arg0: i32, %arg1: i32) -> (i32, i32, i32) {
    %c0_i32 = arith.constant 0 : i32
    %c0_i32_0 = arith.constant 0 : i32
    %c0_i32_1 = arith.constant 0 : i32
    return %arg1, %c0_i32, %c0_i32_0 : i32, i32, i32
  }
  func.func @transform_7(%arg0: i32, %arg1: i32) -> (i32, i32, i32) {
    %c0_i32 = arith.constant 0 : i32
    %c0_i32_0 = arith.constant 0 : i32
    %c0_i32_1 = arith.constant 0 : i32
    return %arg1, %c0_i32, %c0_i32_0 : i32, i32, i32
  }
  func.func @transform_8(%arg0: i32, %arg1: i32) -> (i32, i32) {
    %c0_i32 = arith.constant 0 : i32
    %c0_i32_0 = arith.constant 0 : i32
    return %arg0, %c0_i32 : i32, i32
  }
}

</mosaic_0001>

<bundles_post_ra>
// kernel: tpu_custom_call.1
= control target key start
LH: loop header
LB: loop body
LE: loop exit
PB: predicated region body
PF: predicated region fallthrough
CT: control target
= control target key end

     0   :  { %13 = vsyncpa [#allocation4], 0  ;;  %s1948_s27 = smov 0   ;;  %s1950_s28 = smov 0   ;;  %s2259_s0 = inlined_call_operand.vmem [shape: f32[16,32], index: 0, kind: input, shape index: {}]   ;;  %s2260_s1 = inlined_call_operand.vmem [shape: f32[2,32,96], index: 1, kind: input, shape index: {}]   ;;  %s2261_s2 = inlined_call_operand.vmem [shape: f32[2,1,96], index: 2, kind: input, shape index: {}]   ;;  %s2262_s3 = inlined_call_operand.vmem [shape: f32[2,32,32], index: 3, kind: input, shape index: {}]   ;;  %s2263_s4 = inlined_call_operand.vmem [shape: f32[2,32,64], index: 4, kind: input, shape index: {}]   ;;  %s2264_s5 = inlined_call_operand.vmem [shape: f32[2,1,64], index: 5, kind: input, shape index: {}]   ;;  %s2265_s6 = inlined_call_operand.vmem [shape: f32[2,64,32], index: 6, kind: input, shape index: {}]   ;;  %s2266_s7 = inlined_call_operand.vmem [shape: f32[2,6,32], index: 7, kind: input, shape index: {}]   ;;  %s2267_s8 = inlined_call_operand.hbm [shape: f32[16,32], index: 8, kind: output, shape index: {}]  }
   0x1   :  { %s1952_s29 = smov 0  }
   0x2 LB: > { %s28_s9 = sadd.s32 1, %s1882_s28  ;;  %p1677_p1 = scmp.ge.s32.totalorder %s1886_s29, 1  ;;  %s1886_s29 = sphi %s1952_s29, %s19_s29   ;;  %s1882_s28 = sphi %s1950_s28, %s2271_s28   ;;  %s1878_s27 = sphi %s1948_s27, %s2270_s27  }
   0x3   : > { %p29_p0 = scmp.ge.s32.totalorder %s28_s9, 2  ;;  %p341_p2 = scmp.lt.s32.totalorder %s1886_s29, 3 }
   0x5   : > { %s2273_s9 = smov (%p29_p0, %s28_s9), 0  ;;  %p342_p3 = pnand %p1677_p1, %p341_p2 }
   0x6   : > { %p406_p4 = scmp.lt.s32.totalorder (!%p342_p3), %s1878_s27, 1  ;;  %p1687_p5 = scmp.ne.s32.totalorder (!%p342_p3), %s1878_s27, 0 }
   0x7   : > { %345 = sbr.rel (%p342_p3) target bundleno = 3249 (0xcb1), region = 52 }
   0xc   : > { %s1971_s10 = scalar_select %p406_p4, %s1878_s27, 1 }
   0xe   : > { %s1731_s11 = sshll.u32 %s1971_s10, 5  ;;  %s426_s26 = scalar_lea.vmem %s2264_s5, %s1971_s10 }
   0xf   : > { %s1981_s17 = scalar_lea.vmem %s2260_s1, %s1731_s11  ;;  %s1986_s20 = scalar_lea.vmem %s2262_s3, %s1731_s11 }
  0x10   : > { %s1991_s23 = scalar_lea.vmem %s2263_s4, %s1731_s11  ;;  %s1734_s12 = sshll.u32 %s1971_s10, 6 }
  0x11   : > { %s1686_s13 = sshll.u32 %s1971_s10, 3  ;;  %s2002_s16 = scalar_lea.vmem %s2265_s6, %s1734_s12 }
  0x12   : > { %s2007_s19 = scalar_lea.vmem %s2266_s7, %s1686_s13  ;;  %440 = sbr.rel (%p1687_p5) target bundleno = 26 (0x1a), region = 56 }
  0x17   : > { %v441_v0 = vld [vmem:[%s2259_s0] sm:$0xff]  ;;  %vm443_vm0 = vcmask 261120   ;;  %v442_v1 = vld [vmem:[%s2259_s0 + $0x8] sm:$0xff] }
  0x18   : > { %444 = vst.msk [vmem:[#allocation2] sm:$0xff] %vm443_vm0, %v441_v0 }
  0x19   : > { %445 = vst.msk [vmem:[#allocation2 + $0x8] sm:$0xff] %vm443_vm0, %v442_v1 }
  0x1a PF: > { %vm449_vm1 = vcmask 261120   ;;  %v1888_v4 = vmov 32.0   ;;  %v510_v16 = vld [vmem:[%s1981_s17 + $0x18] sm:$0xff]  ;;  %v509_v17 = vld [vmem:[%s1981_s17 + $0x10] sm:$0xff]  ;;  %v508_v18 = vld [vmem:[%s1981_s17 + $0x8] sm:$0xff]  ;;  %s1889_s25 = smov 120  }
  0x1b   : > { %1786 = vrcp.f32 %v1888_v4  ;;  %533 = vmatpush.msra.mxu0 %v510_v16  ;;  %1735 = vmatpush.msra.mxu2 %v510_v16  ;;  %v507_v19 = vld [vmem:[%s1981_s17] sm:$0xff]  ;;  %s2268_s17 = scalar_lea.vmem %s2261_s2, %s1971_s10  ;;  %s1890_s12 = smov 96   ;;  %vm551_vm6 = vcmask 64512   ;;  %v2079_v58 = vld [vmem:[%s1986_s20 + $0x8] sm:$0xff] }
  0x1c   : > { %v2031_v28 = vld [vmem:[%s2007_s19] sm:$0x3f]  ;;  %s1891_s13 = smov 88   ;;  %s1892_s15 = smov 56  }
  0x1d   : > { %534 = vmatpush.msra.mxu0 %v509_v17  ;;  %1736 = vmatpush.msra.mxu2 %v509_v17  ;;  %v501_v30 = vperm.slane %v2031_v28, 0  ;;  %v504_v33 = vperm.slane %v2031_v28, 1  ;;  %v2045_v36 = vld [vmem:[%s2268_s17] ss:$0 sm:$0xff]  ;;  %s1893_s18 = smov 64   ;;  %s1894_s19 = smov 80  }
  0x1e   : > { %s1895_s11 = smov 48   ;;  %s1896_s21 = smov 112  }
  0x1f   : > { %v2016_v2 = vld [vmem:[#allocation2] sm:$0xff]  ;;  %535 = vmatpush.msra.mxu0 %v508_v18  ;;  %1737 = vmatpush.msra.mxu2 %v508_v18  ;;  %s1897_s22 = smov 72   ;;  %s1898_s24 = smov 104  }
  0x20   : > { %v450_v3 = vsel %vm449_vm1, %v2016_v2, 0.0  ;;  %v2056_v39 = vld [vmem:[#allocation2 + $0x8] sm:$0xff]  ;;  %s1899_s30 = smov 40   ;;  %p1726_p6 = scmp.ne.s32.totalorder %s1878_s27, 1 }
  0x21   : > { %451 = vadd.xlane.f32.xlu0 %v450_v3  ;;  %v1787_v5 = vpop.eup %1786  ;;  %536 = vmatpush.msra.mxu0 %v507_v19  ;;  %v453_v40 = vsel %vm449_vm1, %v2056_v39, 0.0 }
  0x22   : > { %v457_v6 = vmul.f32 32.0, %v1787_v5  ;;  %vm461_vm2 = vweird.f32 %v1787_v5  ;;  %1738 = vmatpush.msra.mxu2 %v507_v19 }
  0x24   : > { %v458_v7 = vsub.f32 1.0, %v457_v6 }
  0x26   : > { %v459_v8 = vmul.f32 %v1787_v5, %v458_v7 }
  0x28   : > { %v460_v9 = vadd.f32 %v1787_v5, %v459_v8 }
  0x2a   : > { %v2020_v10 = vsel %vm461_vm2, %v1787_v5, %v460_v9 }
  0x94   : > { %v452_v11 = vpop.xlane.xlu0 %451 }
  0x95   : > { %v463_v12 = vmul.f32 %v2020_v10, %v452_v11 }
  0x97   : > { %v465_v13 = vsub.f32 %v2016_v2, %v463_v12 }
  0x99   : > { %v467_v14 = vmul.f32 %v465_v13, %v465_v13 }
  0x9b   : > { %v469_v15 = vsel %vm449_vm1, %v467_v14, 0.0 }
  0x9c   : > { %470 = vadd.xlane.f32.xlu0 %v469_v15 }
 0x10f   : > { %v471_v20 = vpop.xlane.xlu0 %470 }
 0x110   : > { %v475_v21 = vmul.f32 %v471_v20, %v2020_v10 }
 0x112   : > { %v477_v22 = vadd.f32 1e-06, %v475_v21 }
 0x114   : > { %1788 = vrsqrt.f32 %v477_v22  ;;  %vm485_vm4 = vweird.f32 %v477_v22 }
 0x11a   : > { %v1789_v23 = vpop.eup %1788 }
 0x11b   : > { %v480_v24 = vmul.f32 %v1789_v23, %v477_v22  ;;  %vm486_vm3 = vweird.f32 %v1789_v23 }
 0x11c   : > { %vm487_vm5 = vmor %vm485_vm4, %vm486_vm3 }
 0x11d   : > { %v481_v25 = vmul.f32 %v1789_v23, %v480_v24 }
 0x11f   : > { %v482_v26 = vmul.f32 0.5, %v481_v25 }
 0x121   : > { %v483_v27 = vsub.f32 1.5, %v482_v26 }
 0x123   : > { %v484_v29 = vmul.f32 %v1789_v23, %v483_v27 }
 0x125   : > { %v488_v31 = vsel %vm487_vm5, %v1789_v23, %v484_v29 }
 0x126   : > { %v499_v32 = vmul.f32 %v488_v31, %v465_v13 }
 0x128   : > { %v502_v34 = vmul.f32 %v501_v30, %v499_v32 }
 0x12a   : > { %v505_v35 = vadd.f32 %v504_v33, %v502_v34 }
 0x12c   : > { %1688 = vmatmul.msk.f32.vlgmr.msra.gmra.mxu0 %vm449_vm1, %v505_v35 }
 0x1a9   : > { %v538_v37 = vpop.f32.mrf.mxu0 }
 0x1aa   : > { %v2048_v38 = vadd.f32 %v2045_v36, %v538_v37 }
 0x1ac   : > { %627 = vrot.lane.b32.xlu2 %v2048_v38, %s1889_s25  ;;  %549 = vrot.lane.b32.xlu1 %v2048_v38, %s1890_s12 }
 0x1b4   : > { %629 = vrot.lane.b32.xlu1 %v2048_v38, %s1891_s13 }
 0x1d5   : > { %454 = vadd.xlane.f32.xlu2 %v453_v40 }
 0x1ed   : > { %680 = vrot.lane.b32.xlu2 %v2048_v38, %s1892_s15 }
 0x206   : > { %v628_v43 = vpop.permute.xlu2 %627 }
 0x21e   : > { %v550_v41 = vpop.permute.xlu1 %549 }
 0x21f   : > { %1690 = vmatpush.xpose.msk.msra.mxu1 %vm551_vm6, %v550_v41 }
 0x222   : > { %1691 = vmatmul.msk.f32.vlgmr.msra.gmra.mxu1 %vm551_vm6, %v2048_v38 }
 0x223   : > { %724 = vmatpush.msrb.mxu1 %v2079_v58 }
 0x226   : > { %v630_v42 = vpop.permute.xlu1 %629 }
 0x227   : > { %1693 = vmatpush.xpose.msk.msra.mxu3 %vm551_vm6, %v630_v42 }
 0x22a   : > { %1694 = vmatmul.msk.f32.vlgmr.msra.gmra.mxu3 %vm551_vm6, %v628_v43 }
 0x248   : > { %v455_v44 = vpop.xlane.xlu2 %454 }
 0x249   : > { %v464_v45 = vmul.f32 %v2020_v10, %v455_v44 }
 0x24b   : > { %v466_v47 = vsub.f32 %v2056_v39, %v464_v45 }
 0x24d   : > { %v468_v50 = vmul.f32 %v466_v47, %v466_v47 }
 0x24f   : > { %v472_v51 = vsel %vm449_vm1, %v468_v50, 0.0 }
 0x250   : > { %v681_v18 = vpop.permute.xlu2 %680 }
 0x29f   : > { %v573_v46 = vpop.f32.mrf.mxu1 }
 0x2a0   : > { %v576_v48 = vmul.f32 0.35355338, %v573_v46 }
 0x2a2   : > { %v577_v49 = vsel %vm551_vm6, %v576_v48, -inf }
 0x2a3   : > { %578 = vmax.xlane.f32.xlu0 %v577_v49 }
 0x2ab   : > { %473 = vadd.xlane.f32.xlu0 %v472_v51 }
 0x2ad   : > { %v652_v52 = vpop.f32.mrf.mxu3 }
 0x2ae   : > { %v655_v53 = vmul.f32 0.35355338, %v652_v52  ;;  %v544_v52 = vld [vmem:[%s1986_s20] sm:$0xff] }
 0x2af   : > { %747 = vmatpush.msrb.mxu3 %v544_v52 }
 0x2b0   : > { %v656_v54 = vsel %vm551_vm6, %v655_v53, -inf }
 0x2b1   : > { %657 = vmax.xlane.f32.xlu1 %v656_v54 }
 0x2bf   : > { %601 = vrot.lane.b32.xlu0 %v2048_v38, %s1893_s18 }
 0x2ca   : > { %754 = vrot.lane.b32.xlu1 %v2048_v38, %s1894_s19 }
 0x2d2   : > { %805 = vrot.lane.b32.xlu1 %v2048_v38, %s1895_s11 }
 0x316   : > { %v579_v55 = vpop.xlane.xlu0 %578 }
 0x317   : > { %v580_v56 = vsub.f32 %v576_v48, %v579_v55 }
 0x319   : > { %v581_v57 = vmul.f32 1.442695, %v580_v56 }
 0x31b   : > { %1790 = vpow2.f32 %v581_v57 }
 0x31e   : > { %v474_v59 = vpop.xlane.xlu0 %473 }
 0x31f   : > { %v476_v60 = vmul.f32 %v474_v59, %v2020_v10 }
 0x321   : > { %v1791_v61 = vpop.eup %1790  ;;  %v478_v62 = vadd.f32 1e-06, %v476_v60 }
 0x322   : > { %v583_v63 = vsel %vm551_vm6, %v1791_v61, 0.0 }
 0x323   : > { %1792 = vrsqrt.f32 %v478_v62  ;;  %584 = vadd.xlane.f32.xlu0 %v583_v63  ;;  %vm495_vm7 = vweird.f32 %v478_v62 }
 0x324   : > { %v658_v0 = vpop.xlane.xlu1 %657 }
 0x325   : > { %v659_v1 = vsub.f32 %v655_v53, %v658_v0  ;;  %v546_v53 = vld [vmem:[%s1986_s20 + $0x10] sm:$0xff] }
 0x326   : > { %849 = vmatpush.msra.mxu3 %v546_v53 }
 0x327   : > { %v660_v3 = vmul.f32 1.442695, %v659_v1 }
 0x329   : > { %v1793_v4 = vpop.eup %1792  ;;  %1794 = vpow2.f32 %v660_v3 }
 0x32a   : > { %v490_v5 = vmul.f32 %v1793_v4, %v478_v62  ;;  %vm496_vm8 = vweird.f32 %v1793_v4 }
 0x32b   : > { %vm497_vm9 = vmor %vm495_vm7, %vm496_vm8 }
 0x32c   : > { %v491_v6 = vmul.f32 %v1793_v4, %v490_v5 }
 0x32e   : > { %v492_v7 = vmul.f32 0.5, %v491_v6 }
 0x32f   : > { %v1795_v8 = vpop.eup %1794 }
 0x330   : > { %v493_v9 = vsub.f32 1.5, %v492_v7  ;;  %v662_v11 = vsel %vm551_vm6, %v1795_v8, 0.0 }
 0x331   : > { %v602_v12 = vpop.permute.xlu0 %601  ;;  %663 = vadd.xlane.f32.xlu0 %v662_v11 }
 0x332   : > { %v494_v13 = vmul.f32 %v1793_v4, %v493_v9  ;;  %622 = vmatpush.msrb.mxu2 %v602_v12 }
 0x334   : > { %v498_v14 = vsel %vm497_vm9, %v1793_v4, %v494_v13 }
 0x335   : > { %v500_v15 = vmul.f32 %v498_v14, %v466_v47 }
 0x337   : > { %v503_v16 = vmul.f32 %v501_v30, %v500_v15 }
 0x339   : > { %v506_v17 = vadd.f32 %v504_v33, %v503_v16 }
 0x33b   : > { %1689 = vmatmul.msk.f32.vlgmr.msra.gmra.mxu2 %vm449_vm1, %v506_v17 }
 0x33c   : > { %701 = vmatpush.msra.mxu2 %v681_v18  ;;  %v755_v19 = vpop.permute.xlu1 %754 }
 0x344   : > { %v806_v20 = vpop.permute.xlu1 %805 }
 0x345   : > { %752 = vrot.lane.b32.xlu0 %v2048_v38, %s1896_s21  ;;  %826 = vmatpush.msra.mxu1 %v806_v20 }
 0x396   : > { %v585_v21 = vpop.xlane.xlu0 %584 }
 0x397   : > { %1796 = vrcp.f32 %v585_v21  ;;  %v597_v25 = vand.u32 2147483648, %v585_v21  ;;  %v595_v27 = vand.u32 2147483647, %v585_v21  ;;  %vm591_vm11 = vweird.f32 %v585_v21 }
 0x399   : > { %v598_v31 = vor.u32 1.1754944e-38, %v597_v25  ;;  %vm596_vm13 = vcmp.eq.f32.partialorder %v595_v27, 8.507059e+37 }
 0x39d   : > { %v1797_v22 = vpop.eup %1796 }
 0x39e   : > { %v587_v23 = vmul.f32 %v1797_v22, %v585_v21  ;;  %vm592_vm10 = vweird.f32 %v1797_v22 }
 0x39f   : > { %vm593_vm12 = vmor %vm591_vm11, %vm592_vm10 }
 0x3a0   : > { %v588_v24 = vsub.f32 1.0, %v587_v23 }
 0x3a2   : > { %v589_v26 = vmul.f32 %v1797_v22, %v588_v24 }
 0x3a4   : > { %v590_v29 = vadd.f32 %v1797_v22, %v589_v26  ;;  %v664_v30 = vpop.xlane.xlu0 %663 }
 0x3a5   : > { %1798 = vrcp.f32 %v664_v30  ;;  %v676_v41 = vand.u32 2147483648, %v664_v30  ;;  %v674_v43 = vand.u32 2147483647, %v664_v30  ;;  %vm670_vm15 = vweird.f32 %v664_v30 }
 0x3a6   : > { %v594_v32 = vsel %vm593_vm12, %v1797_v22, %v590_v29 }
 0x3a7   : > { %v599_v33 = vsel %vm596_vm13, %v598_v31, %v594_v32  ;;  %v677_v45 = vor.u32 1.1754944e-38, %v676_v41  ;;  %vm675_vm2 = vcmp.eq.f32.partialorder %v674_v43, 8.507059e+37 }
 0x3a8   : > { %v600_v34 = vmul.f32 %v1791_v61, %v599_v33 }
 0x3aa   : > { %1692 = vmatmul.msk.f32.vlgmr.msrb.gmra.mxu2 %vm551_vm6, %v600_v34 }
 0x3ab   : > { %v1799_v35 = vpop.eup %1798  ;;  %1698 = vmatpush.xpose.msk.msrb.mxu2 %vm551_vm6, %v755_v19 }
 0x3ac   : > { %v666_v37 = vmul.f32 %v1799_v35, %v664_v30  ;;  %vm671_vm14 = vweird.f32 %v1799_v35 }
 0x3ad   : > { %vm672_vm0 = vmor %vm670_vm15, %vm671_vm14 }
 0x3ae   : > { %v667_v40 = vsub.f32 1.0, %v666_v37 }
 0x3b0   : > { %v668_v42 = vmul.f32 %v1799_v35, %v667_v40 }
 0x3b2   : > { %v669_v44 = vadd.f32 %v1799_v35, %v668_v42 }
 0x3b4   : > { %v673_v46 = vsel %vm672_vm0, %v1799_v35, %v669_v44 }
 0x3b5   : > { %v678_v47 = vsel %vm675_vm2, %v677_v45, %v673_v46 }
 0x3b6   : > { %v679_v48 = vmul.f32 %v1795_v8, %v678_v47 }
 0x3b7   : > { %v753_v50 = vpop.permute.xlu0 %752 }
 0x3b8   : > { %1695 = vmatmul.msk.f32.vlgmr.msra.gmra.mxu2 %vm551_vm6, %v679_v48 }
 0x3be   : > { %v541_v49 = vpop.f32.mrf.mxu2 }
 0x3bf   : > { %v2096_v51 = vadd.f32 %v2045_v36, %v541_v49 }
 0x3c0   : > { %1699 = vmatmul.msk.f32.vlgmr.msrb.gmra.mxu2 %vm551_vm6, %v753_v50 }
 0x3c1   : > { %959 = vrot.lane.b32.xlu1 %v2096_v51, %s1890_s12 }
 0x3c9   : > { %857 = vrot.lane.b32.xlu1 %v2048_v38, %s1897_s22 }
 0x3d1   : > { %855 = vrot.lane.b32.xlu1 %v2048_v38, %s1898_s24 }
 0x42d   : > { %v624_v54 = vpop.f32.mrf.mxu2 }
 0x42e   : > { %1697 = vmatmul.msk.f32.vlgmr.msrb.gmra.mxu3 %vm551_vm6, %v624_v54 }
 0x433   : > { %v960_v36 = vpop.permute.xlu1 %959 }
 0x434   : > { %1706 = vmatpush.xpose.msk.msrb.mxu3 %vm551_vm6, %v960_v36 }
 0x43b   : > { %v703_v55 = vpop.f32.mrf.mxu2  ;;  %v858_v56 = vpop.permute.xlu1 %857 }
 0x43c   : > { %1696 = vmatmul.msk.f32.vlgmr.msrb.gmra.mxu1 %vm551_vm6, %v703_v55 }
 0x43d   : > { %1702 = vmatpush.xpose.msk.msrb.mxu1 %vm551_vm6, %v858_v56 }
 0x443   : > { %v777_v57 = vpop.f32.mrf.mxu2  ;;  %v856_v16 = vpop.permute.xlu1 %855 }
 0x444   : > { %v780_v59 = vmul.f32 0.35355338, %v777_v57 }
 0x446   : > { %v781_v60 = vsel %vm551_vm6, %v780_v59, -inf }
 0x447   : > { %782 = vmax.xlane.f32.xlu2 %v781_v60 }
 0x4b1   : > { %v2131_v20 = vpop.f32.mrf.mxu3 }
 0x4b9   : > { %v2125_v18 = vpop.f32.mrf.mxu1 }
 0x4ba   : > { %v783_v61 = vpop.xlane.xlu2 %782 }
 0x4bb   : > { %v784_v62 = vsub.f32 %v780_v59, %v783_v61 }
 0x4bd   : > { %v785_v63 = vmul.f32 1.442695, %v784_v62 }
 0x4bf   : > { %1800 = vpow2.f32 %v785_v63 }
 0x4c5   : > { %v1801_v0 = vpop.eup %1800 }
 0x4c6   : > { %v787_v1 = vsel %vm551_vm6, %v1801_v0, 0.0 }
 0x4c7   : > { %788 = vadd.xlane.f32.xlu0 %v787_v1 }
 0x4db   : > { %1010 = vrot.lane.b32.xlu0 %v2096_v51, %s1893_s18 }
 0x4e3   : > { %908 = vrot.lane.b32.xlu0 %v2048_v38, %s1899_s30 }
 0x4eb   : > { %1036 = vrot.lane.b32.xlu0 %v2096_v51, %s1889_s25 }
 0x4f3   : > { %1163 = vrot.lane.b32.xlu0 %v2096_v51, %s1894_s19 }
 0x4fb   : > { %1266 = vrot.lane.b32.xlu0 %v2096_v51, %s1897_s22 }
 0x53a   : > { %v789_v3 = vpop.xlane.xlu0 %788 }
 0x53b   : > { %1802 = vrcp.f32 %v789_v3  ;;  %v801_v7 = vand.u32 2147483648, %v789_v3  ;;  %v799_v9 = vand.u32 2147483647, %v789_v3  ;;  %vm795_vm4 = vweird.f32 %v789_v3 }
 0x53d   : > { %v802_v38 = vor.u32 1.1754944e-38, %v801_v7  ;;  %vm800_vm7 = vcmp.eq.f32.partialorder %v799_v9, 8.507059e+37 }
 0x541   : > { %v1803_v4 = vpop.eup %1802 }
 0x542   : > { %v791_v5 = vmul.f32 %v1803_v4, %v789_v3  ;;  %vm796_vm3 = vweird.f32 %v1803_v4 }
 0x543   : > { %vm797_vm5 = vmor %vm795_vm4, %vm796_vm3 }
 0x544   : > { %v792_v6 = vsub.f32 1.0, %v791_v5 }
 0x546   : > { %v793_v8 = vmul.f32 %v1803_v4, %v792_v6 }
 0x548   : > { %v794_v11 = vadd.f32 %v1803_v4, %v793_v8  ;;  %v2153_v8 = vld [vmem:[%s1986_s20 + $0x18] sm:$0xff] }
 0x54a   : > { %v798_v12 = vsel %vm797_vm5, %v1803_v4, %v794_v11 }
 0x54b   : > { %v803_v13 = vsel %vm800_vm7, %v802_v38, %v798_v12 }
 0x54c   : > { %v804_v14 = vmul.f32 %v1801_v0, %v803_v13 }
 0x54d   : > { %v1011_v15 = vpop.permute.xlu0 %1010 }
 0x54e   : > { %1700 = vmatmul.msk.f32.vlgmr.msra.gmra.mxu1 %vm551_vm6, %v804_v14  ;;  %1031 = vmatpush.msrb.mxu0 %v1011_v15 }
 0x54f   : > { %952 = vmatpush.msra.mxu1 %v2153_v8 }
 0x550   : > { %1156 = vmatpush.msra.mxu0 %v544_v52 }
 0x555   : > { %v909_v17 = vpop.permute.xlu0 %908 }
 0x556   : > { %1703 = vmatmul.msk.f32.vlgmr.msrb.gmra.mxu1 %vm551_vm6, %v856_v16  ;;  %929 = vmatpush.msra.mxu2 %v909_v17 }
 0x55d   : > { %v1037_v41 = vpop.permute.xlu0 %1036 }
 0x565   : > { %v1164_v46 = vpop.permute.xlu0 %1163 }
 0x56d   : > { %v1267_v62 = vpop.permute.xlu0 %1266 }
 0x5cb   : > { %v828_v19 = vpop.f32.mrf.mxu1 }
 0x5cc   : > { %1701 = vmatmul.msk.f32.vlgmr.msra.gmra.mxu3 %vm551_vm6, %v828_v19 }
 0x5cd   : > { %1133 = vmatpush.msra.mxu3 %v2079_v58 }
 0x5d3   : > { %v880_v25 = vpop.f32.mrf.mxu1 }
 0x5d4   : > { %1707 = vmatmul.msk.f32.vlgmr.msrb.gmra.mxu3 %vm551_vm6, %v2096_v51  ;;  %v883_v26 = vmul.f32 0.35355338, %v880_v25 }
 0x5d5   : > { %1258 = vmatpush.msrb.mxu3 %v546_v53 }
 0x5d6   : > { %v884_v27 = vsel %vm551_vm6, %v883_v26, -inf }
 0x64f   : > { %v2133_v21 = vpop.f32.mrf.mxu3 }
 0x657   : > { %v982_v22 = vpop.f32.mrf.mxu3 }
 0x658   : > { %v985_v23 = vmul.f32 0.35355338, %v982_v22 }
 0x65a   : > { %v986_v24 = vsel %vm551_vm6, %v985_v23, -inf }
 0x65b   : > { %987 = vmax.xlane.f32.xlu2 %v986_v24 }
 0x663   : > { %885 = vmax.xlane.f32.xlu2 %v884_v27 }
 0x6ce   : > { %v988_v29 = vpop.xlane.xlu2 %987 }
 0x6cf   : > { %v989_v58 = vsub.f32 %v985_v23, %v988_v29 }
 0x6d1   : > { %v990_v30 = vmul.f32 1.442695, %v989_v58 }
 0x6d3   : > { %1804 = vpow2.f32 %v990_v30 }
 0x6d6   : > { %v886_v31 = vpop.xlane.xlu2 %885 }
 0x6d7   : > { %v887_v32 = vsub.f32 %v883_v26, %v886_v31 }
 0x6d9   : > { %v1805_v33 = vpop.eup %1804  ;;  %v888_v34 = vmul.f32 1.442695, %v887_v32 }
 0x6da   : > { %v992_v35 = vsel %vm551_vm6, %v1805_v33, 0.0 }
 0x6db   : > { %1806 = vpow2.f32 %v888_v34  ;;  %993 = vadd.xlane.f32.xlu1 %v992_v35  ;;  %v750_v35 = vadd.f32 %v2131_v20, %v2125_v18 }
 0x6e1   : > { %v1807_v37 = vpop.eup %1806 }
 0x6e2   : > { %v890_v40 = vsel %vm551_vm6, %v1807_v37, 0.0 }
 0x6e3   : > { %891 = vadd.xlane.f32.xlu2 %v890_v40  ;;  %v854_v40 = vadd.f32 %v2133_v21, %v750_v35  ;;  %v1424_v35 = vld [vmem:[%s1991_s23 + $0x10] sm:$0xff] }
 0x6f4   : > { %1161 = vrot.lane.b32.xlu1 %v2096_v51, %s1896_s21 }
 0x6fb   : > { %1038 = vrot.lane.b32.xlu2 %v2096_v51, %s1891_s13 }
 0x703   : > { %1264 = vrot.lane.b32.xlu2 %v2096_v51, %s1898_s24 }
 0x74e   : > { %v994_v42 = vpop.xlane.xlu1 %993 }
 0x74f   : > { %1808 = vrcp.f32 %v994_v42  ;;  %v1006_v48 = vand.u32 2147483648, %v994_v42  ;;  %v1004_v50 = vand.u32 2147483647, %v994_v42  ;;  %vm1000_vm9 = vweird.f32 %v994_v42 }
 0x751   : > { %v1007_v54 = vor.u32 1.1754944e-38, %v1006_v48  ;;  %vm1005_vm11 = vcmp.eq.f32.partialorder %v1004_v50, 8.507059e+37 }
 0x755   : > { %v1809_v43 = vpop.eup %1808 }
 0x756   : > { %v996_v44 = vmul.f32 %v1809_v43, %v994_v42  ;;  %v892_v45 = vpop.xlane.xlu2 %891  ;;  %vm1001_vm8 = vweird.f32 %v1809_v43 }
 0x757   : > { %1810 = vrcp.f32 %v892_v45  ;;  %vm1002_vm10 = vmor %vm1000_vm9, %vm1001_vm8  ;;  %v904_v61 = vand.u32 2147483648, %v892_v45  ;;  %v902_v0 = vand.u32 2147483647, %v892_v45  ;;  %vm898_vm13 = vweird.f32 %v892_v45 }
 0x758   : > { %v997_v47 = vsub.f32 1.0, %v996_v44 }
 0x759   : > { %v905_v3 = vor.u32 1.1754944e-38, %v904_v61  ;;  %vm903_vm15 = vcmp.eq.f32.partialorder %v902_v0, 8.507059e+37 }
 0x75a   : > { %v998_v49 = vmul.f32 %v1809_v43, %v997_v47 }
 0x75c   : > { %v999_v52 = vadd.f32 %v1809_v43, %v998_v49 }
 0x75d   : > { %v1811_v53 = vpop.eup %1810 }
 0x75e   : > { %v894_v36 = vmul.f32 %v1811_v53, %v892_v45  ;;  %v1039_v55 = vpop.permute.xlu2 %1038  ;;  %v1003_v56 = vsel %vm1002_vm10, %v1809_v43, %v999_v52  ;;  %vm899_vm12 = vweird.f32 %v1811_v53  ;;  %v1369_v43 = vperm.slane %v2031_v28, 4 }
 0x75f   : > { %1709 = vmatpush.xpose.msk.msrb.mxu2 %vm551_vm6, %v1039_v55  ;;  %v1008_v57 = vsel %vm1005_vm11, %v1007_v54, %v1003_v56  ;;  %vm900_vm14 = vmor %vm898_vm13, %vm899_vm12 }
 0x760   : > { %v895_v59 = vsub.f32 1.0, %v894_v36  ;;  %v1009_v60 = vmul.f32 %v1805_v33, %v1008_v57 }
 0x762   : > { %v896_v63 = vmul.f32 %v1811_v53, %v895_v59  ;;  %1708 = vmatmul.msk.f32.vlgmr.msrb.gmra.mxu0 %vm551_vm6, %v1009_v60 }
 0x763   : > { %1718 = vmatpush.xpose.msk.msrb.mxu0 %vm551_vm6, %v1267_v62 }
 0x764   : > { %v897_v1 = vadd.f32 %v1811_v53, %v896_v63 }
 0x766   : > { %v901_v4 = vsel %vm900_vm14, %v1811_v53, %v897_v1  ;;  %v1162_v7 = vpop.permute.xlu1 %1161  ;;  %v1265_v11 = vpop.permute.xlu2 %1264 }
 0x767   : > { %v906_v5 = vsel %vm903_vm15, %v905_v3, %v901_v4 }
 0x768   : > { %v907_v6 = vmul.f32 %v1807_v37, %v906_v5 }
 0x76a   : > { %1704 = vmatmul.msk.f32.vlgmr.msra.gmra.mxu2 %vm551_vm6, %v907_v6 }
 0x76b   : > { %1714 = vmatpush.xpose.msk.msra.mxu2 %vm551_vm6, %v1164_v46 }
 0x772   : > { %1710 = vmatmul.msk.f32.vlgmr.msrb.gmra.mxu2 %vm551_vm6, %v1037_v41 }
 0x77a   : > { %1715 = vmatmul.msk.f32.vlgmr.msra.gmra.mxu2 %vm551_vm6, %v1162_v7 }
 0x7df   : > { %v1033_v9 = vpop.f32.mrf.mxu0 }
 0x7e0   : > { %1713 = vmatmul.msk.f32.vlgmr.msra.gmra.mxu0 %vm551_vm6, %v1033_v9 }
 0x7e8   : > { %1719 = vmatmul.msk.f32.vlgmr.msrb.gmra.mxu0 %vm551_vm6, %v1265_v11 }
 0x7ed   : > { %v931_v38 = vpop.f32.mrf.mxu2 }
 0x7ee   : > { %1705 = vmatmul.msk.f32.vlgmr.msra.gmra.mxu1 %vm551_vm6, %v931_v38 }
 0x7f5   : > { %v1061_v12 = vpop.f32.mrf.mxu2 }
 0x7f6   : > { %v1064_v13 = vmul.f32 0.35355338, %v1061_v12 }
 0x7f8   : > { %v1065_v14 = vsel %vm551_vm6, %v1064_v13, -inf }
 0x7f9   : > { %1066 = vmax.xlane.f32.xlu0 %v1065_v14 }
 0x7fd   : > { %v1186_v15 = vpop.f32.mrf.mxu2 }
 0x7fe   : > { %v1189_v16 = vmul.f32 0.35355338, %v1186_v15 }
 0x800   : > { %v1190_v17 = vsel %vm551_vm6, %v1189_v16, -inf }
 0x801   : > { %1191 = vmax.xlane.f32.xlu2 %v1190_v17 }
 0x85d   : > { %v2161_v19 = vpop.f32.mrf.mxu0 }
 0x865   : > { %v1289_v22 = vpop.f32.mrf.mxu0 }
 0x866   : > { %v1292_v23 = vmul.f32 0.35355338, %v1289_v22 }
 0x868   : > { %v1293_v24 = vsel %vm551_vm6, %v1292_v23, -inf }
 0x869   : > { %1294 = vmax.xlane.f32.xlu1 %v1293_v24 }
 0x86b   : > { %v954_v37 = vpop.f32.mrf.mxu1 }
 0x86c   : > { %v1067_v25 = vpop.xlane.xlu0 %1066  ;;  %v957_v41 = vadd.f32 %v954_v37, %v854_v40  ;;  %v1423_v37 = vld [vmem:[%s1991_s23 + $0x8] sm:$0xff]  ;;  %v1422_v40 = vld [vmem:[%s1991_s23] sm:$0xff] }
 0x86d   : > { %v1068_v26 = vsub.f32 %v1064_v13, %v1067_v25 }
 0x86e   : > { %v1367_v42 = vadd.f32 %v957_v41, %v2016_v2 }
 0x86f   : > { %v1069_v27 = vmul.f32 1.442695, %v1068_v26 }
 0x870   : > { %v2177_v44 = vadd.f32 %v1369_v43, %v1367_v42 }
 0x871   : > { %1812 = vpow2.f32 %v1069_v27 }
 0x872   : > { %v1372_v45 = vsel %vm449_vm1, %v2177_v44, 0.0 }
 0x874   : > { %v1192_v29 = vpop.xlane.xlu2 %1191 }
 0x875   : > { %v1193_v58 = vsub.f32 %v1189_v16, %v1192_v29 }
 0x877   : > { %v1813_v30 = vpop.eup %1812  ;;  %v1194_v31 = vmul.f32 1.442695, %v1193_v58 }
 0x878   : > { %v1071_v32 = vsel %vm551_vm6, %v1813_v30, 0.0 }
 0x879   : > { %1814 = vpow2.f32 %v1194_v31  ;;  %1072 = vadd.xlane.f32.xlu2 %v1071_v32 }
 0x87f   : > { %v1815_v33 = vpop.eup %1814 }
 0x880   : > { %v1196_v34 = vsel %vm551_vm6, %v1815_v33, 0.0 }
 0x881   : > { %1197 = vadd.xlane.f32.xlu0 %v1196_v34  ;;  %v1425_v34 = vld [vmem:[%s1991_s23 + $0x18] sm:$0xff] }
 0x882   : > { %1214 = vrot.lane.b32.xlu1 %v2096_v51, %s1895_s11 }
 0x895   : > { %1089 = vrot.lane.b32.xlu0 %v2096_v51, %s1892_s15 }
 0x8bf   : > { %1373 = vadd.xlane.f32.xlu0 %v1372_v45 }
 0x8dc   : > { %v1295_v46 = vpop.xlane.xlu1 %1294 }
 0x8dd   : > { %v1296_v47 = vsub.f32 %v1292_v23, %v1295_v46 }
 0x8df   : > { %v1297_v48 = vmul.f32 1.442695, %v1296_v47 }
 0x8e1   : > { %1816 = vpow2.f32 %v1297_v48 }
 0x8e7   : > { %v2181_v18 = vpop.eup %1816 }
 0x8e8   : > { %v1299_v20 = vsel %vm551_vm6, %v2181_v18, 0.0 }
 0x8e9   : > { %1300 = vadd.xlane.f32.xlu2 %v1299_v20 }
 0x8ec   : > { %v1073_v2 = vpop.xlane.xlu2 %1072 }
 0x8ed   : > { %1818 = vrcp.f32 %v1073_v2  ;;  %v1085_v56 = vand.u32 2147483648, %v1073_v2  ;;  %vm1079_vm2 = vweird.f32 %v1073_v2  ;;  %v1083_v59 = vand.u32 2147483647, %v1073_v2 }
 0x8ef   : > { %v1086_v62 = vor.u32 1.1754944e-38, %v1085_v56  ;;  %vm1084_vm4 = vcmp.eq.f32.partialorder %v1083_v59, 8.507059e+37  ;;  %v1483_v56 = vld [vmem:[%s2002_s16 + $0x30] sm:$0xff] }
 0x8f3   : > { %v1819_v21 = vpop.eup %1818 }
 0x8f4   : > { %v1075_v49 = vmul.f32 %v1819_v21, %v1073_v2  ;;  %v1198_v50 = vpop.xlane.xlu0 %1197  ;;  %vm1080_vm0 = vweird.f32 %v1819_v21  ;;  %v1215_v7 = vpop.permute.xlu1 %1214 }
 0x8f5   : > { %1820 = vrcp.f32 %v1198_v50  ;;  %vm1081_vm3 = vmor %vm1079_vm2, %vm1080_vm0  ;;  %v1210_v1 = vand.u32 2147483648, %v1198_v50  ;;  %vm1204_vm7 = vweird.f32 %v1198_v50  ;;  %v1208_v3 = vand.u32 2147483647, %v1198_v50 }
 0x8f6   : > { %v1076_v52 = vsub.f32 1.0, %v1075_v49 }
 0x8f7   : > { %v1211_v9 = vor.u32 1.1754944e-38, %v1210_v1  ;;  %vm1209_vm9 = vcmp.eq.f32.partialorder %v1208_v3, 8.507059e+37  ;;  %v1785_v3 = vld [vmem:[%s426_s26] ss:$0 sm:$0xff] }
 0x8f8   : > { %v1077_v53 = vmul.f32 %v1819_v21, %v1076_v52  ;;  %v1419_v52 = vperm.slane %v2031_v28, 3 }
 0x8fa   : > { %v1078_v55 = vadd.f32 %v1819_v21, %v1077_v53 }
 0x8fb   : > { %v1821_v54 = vpop.eup %1820 }
 0x8fc   : > { %v1200_v36 = vmul.f32 %v1821_v54, %v1198_v50  ;;  %v1082_v60 = vsel %vm1081_vm3, %v1819_v21, %v1078_v55  ;;  %vm1205_vm5 = vweird.f32 %v1821_v54  ;;  %v1416_v21 = vperm.slane %v2031_v28, 2  ;;  %v1484_v55 = vld [vmem:[%s2002_s16 + $0x38] sm:$0xff] }
 0x8fd   : > { %v1087_v63 = vsel %vm1084_vm4, %v1086_v62, %v1082_v60  ;;  %vm1206_vm8 = vmor %vm1204_vm7, %vm1205_vm5  ;;  %1501 = vmatpush.msra.mxu0 %v1484_v55  ;;  %v1481_v60 = vld [vmem:[%s2002_s16 + $0x20] sm:$0xff]  ;;  %v1479_v62 = vld [vmem:[%s2002_s16 + $0x10] sm:$0xff] }
 0x8fe   : > { %v1201_v57 = vsub.f32 1.0, %v1200_v36  ;;  %v1088_v5 = vmul.f32 %v1813_v30, %v1087_v63  ;;  %v1478_v63 = vld [vmem:[%s2002_s16 + $0x8] sm:$0xff] }
 0x8ff   : > { %1502 = vmatpush.msra.mxu0 %v1483_v56 }
 0x900   : > { %v1202_v61 = vmul.f32 %v1821_v54, %v1201_v57  ;;  %v1482_v57 = vld [vmem:[%s2002_s16 + $0x28] sm:$0xff] }
 0x901   : > { %1317 = vrot.lane.b32.xlu2 %v2096_v51, %s1899_s30  ;;  %1503 = vmatpush.msra.mxu0 %v1482_v57 }
 0x902   : > { %v1203_v0 = vadd.f32 %v1821_v54, %v1202_v61  ;;  %v1480_v61 = vld [vmem:[%s2002_s16 + $0x18] sm:$0xff] }
 0x903   : > { %1504 = vmatpush.msra.mxu0 %v1481_v60 }
 0x904   : > { %v1207_v6 = vsel %vm1206_vm8, %v1821_v54, %v1203_v0  ;;  %v1477_v0 = vld [vmem:[%s2002_s16] sm:$0xff] }
 0x905   : > { %v1212_v51 = vsel %vm1209_vm9, %v1211_v9, %v1207_v6  ;;  %1505 = vmatpush.msra.mxu0 %v1480_v61 }
 0x906   : > { %v1213_v11 = vmul.f32 %v1815_v33, %v1212_v51 }
 0x907   : > { %v1090_v4 = vpop.permute.xlu0 %1089  ;;  %1506 = vmatpush.msra.mxu0 %v1479_v62 }
 0x908   : > { %1110 = vmatpush.msrb.mxu1 %v1090_v4 }
 0x909   : > { %1711 = vmatmul.msk.f32.vlgmr.msrb.gmra.mxu1 %vm551_vm6, %v1088_v5  ;;  %1507 = vmatpush.msra.mxu0 %v1478_v63 }
 0x90a   : > { %1235 = vmatpush.msra.mxu1 %v1215_v7 }
 0x90b   : > { %1508 = vmatpush.msra.mxu0 %v1477_v0 }
 0x90c   : > { %1361 = vmatpush.msrb.mxu1 %v2153_v8 }
 0x911   : > { %1716 = vmatmul.msk.f32.vlgmr.msra.gmra.mxu1 %vm551_vm6, %v1213_v11 }
 0x932   : > { %v1374_v38 = vpop.xlane.xlu0 %1373 }
 0x933   : > { %v1378_v12 = vmul.f32 %v1374_v38, %v2020_v10 }
 0x935   : > { %v1380_v13 = vsub.f32 %v2177_v44, %v1378_v12 }
 0x937   : > { %v1382_v14 = vmul.f32 %v1380_v13, %v1380_v13 }
 0x939   : > { %v1384_v15 = vsel %vm449_vm1, %v1382_v14, 0.0 }
 0x93a   : > { %1385 = vadd.xlane.f32.xlu2 %v1384_v15 }
 0x95c   : > { %v1301_v16 = vpop.xlane.xlu2 %1300 }
 0x95d   : > { %1822 = vrcp.f32 %v1301_v16  ;;  %v1313_v24 = vand.u32 2147483648, %v1301_v16  ;;  %v1311_v26 = vand.u32 2147483647, %v1301_v16  ;;  %vm1307_vm11 = vweird.f32 %v1301_v16 }
 0x95f   : > { %v1314_v29 = vor.u32 1.1754944e-38, %v1313_v24  ;;  %vm1312_vm13 = vcmp.eq.f32.partialorder %v1311_v26, 8.507059e+37 }
 0x963   : > { %v1823_v17 = vpop.eup %1822 }
 0x964   : > { %v1303_v22 = vmul.f32 %v1823_v17, %v1301_v16  ;;  %v1318_v23 = vpop.permute.xlu2 %1317  ;;  %vm1308_vm10 = vweird.f32 %v1823_v17 }
 0x965   : > { %1338 = vmatpush.msrb.mxu2 %v1318_v23  ;;  %vm1309_vm12 = vmor %vm1307_vm11, %vm1308_vm10 }
 0x966   : > { %v1304_v8 = vsub.f32 1.0, %v1303_v22 }
 0x968   : > { %v1305_v25 = vmul.f32 %v1823_v17, %v1304_v8 }
 0x96a   : > { %v1306_v27 = vadd.f32 %v1823_v17, %v1305_v25  ;;  %v1485_v25 = vperm.slane %v2031_v28, 5 }
 0x96c   : > { %v1310_v58 = vsel %vm1309_vm12, %v1823_v17, %v1306_v27 }
 0x96d   : > { %v1315_v30 = vsel %vm1312_vm13, %v1314_v29, %v1310_v58 }
 0x96e   : > { %v1316_v31 = vmul.f32 %v2181_v18, %v1315_v30 }
 0x970   : > { %1720 = vmatmul.msk.f32.vlgmr.msrb.gmra.mxu2 %vm551_vm6, %v1316_v31 }
 0x986   : > { %v1112_v32 = vpop.f32.mrf.mxu1 }
 0x987   : > { %1712 = vmatmul.msk.f32.vlgmr.msra.gmra.mxu3 %vm551_vm6, %v1112_v32 }
 0x988   : > { %1448 = vmatpush.msra.mxu3 %v1425_v34 }
 0x98a   : > { %1449 = vmatpush.msra.mxu3 %v1424_v35 }
 0x98c   : > { %1450 = vmatpush.msra.mxu3 %v1423_v37 }
 0x98e   : > { %v1237_v33 = vpop.f32.mrf.mxu1  ;;  %1451 = vmatpush.msra.mxu3 %v1422_v40 }
 0x98f   : > { %1717 = vmatmul.msk.f32.vlgmr.msrb.gmra.mxu3 %vm551_vm6, %v1237_v33 }
 0x9ad   : > { %v1386_v41 = vpop.xlane.xlu2 %1385 }
 0x9ae   : > { %v1390_v42 = vmul.f32 %v1386_v41, %v2020_v10 }
 0x9b0   : > { %v1392_v45 = vadd.f32 1e-06, %v1390_v42 }
 0x9b2   : > { %1824 = vrsqrt.f32 %v1392_v45  ;;  %vm1400_vm15 = vweird.f32 %v1392_v45 }
 0x9b8   : > { %v1825_v46 = vpop.eup %1824 }
 0x9b9   : > { %v1395_v47 = vmul.f32 %v1825_v46, %v1392_v45  ;;  %vm1401_vm14 = vweird.f32 %v1825_v46 }
 0x9ba   : > { %vm1402_vm0 = vmor %vm1400_vm15, %vm1401_vm14 }
 0x9bb   : > { %v1396_v48 = vmul.f32 %v1825_v46, %v1395_v47 }
 0x9bd   : > { %v1397_v18 = vmul.f32 0.5, %v1396_v48 }
 0x9bf   : > { %v1398_v20 = vsub.f32 1.5, %v1397_v18 }
 0x9c1   : > { %v1399_v2 = vmul.f32 %v1825_v46, %v1398_v20 }
 0x9c3   : > { %v1403_v49 = vsel %vm1402_vm0, %v1825_v46, %v1399_v2 }
 0x9c4   : > { %v1414_v50 = vmul.f32 %v1403_v49, %v1380_v13 }
 0x9c6   : > { %v1417_v53 = vmul.f32 %v1416_v21, %v1414_v50 }
 0x9c8   : > { %v1420_v54 = vadd.f32 %v1419_v52, %v1417_v53 }
 0x9ca   : > { %1722 = vmatmul.msk.f32.vlgmr.msra.gmra.mxu3 %vm449_vm1, %v1420_v54 }
 0x9f3   : > { %v1340_v36 = vpop.f32.mrf.mxu2 }
 0x9f4   : > { %1721 = vmatmul.msk.f32.vlgmr.msrb.gmra.mxu1 %vm551_vm6, %v1340_v36  ;;  %vm1486_vm6 = vcmask 523264  }
 0xa0a   : > { %v1135_v59 = vpop.f32.mrf.mxu3 }
 0xa0b   : > { %v1159_v15 = vadd.f32 %v2161_v19, %v1135_v59 }
 0xa12   : > { %v1260_v1 = vpop.f32.mrf.mxu3 }
 0xa13   : > { %v1263_v16 = vadd.f32 %v1260_v1, %v1159_v15 }
 0xa4d   : > { %v1453_v4 = vpop.f32.mrf.mxu3 }
 0xa4e   : > { %v1454_v5 = vadd.f32 %v1785_v3, %v1453_v4 }
 0xa50   : > { %v1461_v6 = vmul.f32 %v1454_v5, %v1454_v5  ;;  %v1459_v12 = vmul.f32 0.5, %v1454_v5 }
 0xa52   : > { %v1463_v7 = vmul.f32 %v1461_v6, %v1454_v5 }
 0xa54   : > { %v1465_v9 = vmul.f32 0.044715, %v1463_v7 }
 0xa56   : > { %v1467_v51 = vadd.f32 %v1465_v9, %v1454_v5 }
 0xa58   : > { %v1469_v11 = vmul.f32 0.7978846, %v1467_v51 }
 0xa5a   : > { %1826 = vtanh.f32 %v1469_v11 }
 0xa60   : > { %v1827_v38 = vpop.eup %1826 }
 0xa61   : > { %v1473_v13 = vadd.f32 1.0, %v1827_v38 }
 0xa63   : > { %v1475_v14 = vmul.f32 %v1473_v13, %v1459_v12 }
 0xa65   : > { %1724 = vmatmul.msk.f32.vlgmr.msra.gmra.mxu0 %vm1486_vm6, %v1475_v14 }
 0xa71   : > { %v1363_v17 = vpop.f32.mrf.mxu1 }
 0xa72   : > { %v1366_v22 = vadd.f32 %v1363_v17, %v1263_v16 }
 0xa74   : > { %v1368_v23 = vadd.f32 %v1366_v22, %v2056_v39 }
 0xa76   : > { %v1371_v8 = vadd.f32 %v1369_v43, %v1368_v23 }
 0xa78   : > { %v1375_v24 = vsel %vm449_vm1, %v1371_v8, 0.0 }
 0xa79   : > { %1376 = vadd.xlane.f32.xlu1 %v1375_v24 }
 0xae2   : > { %v1510_v26 = vpop.f32.mrf.mxu0 }
 0xae3   : > { %v1511_v27 = vadd.f32 %v1510_v26, %v1485_v25 }
 0xae5   : > { %v1516_v29 = vadd.f32 %v1511_v27, %v2177_v44 }
 0xae7   : > { %1518 = vst.msk [vmem:[#allocation2] sm:$0xff] %vm449_vm1, %v1516_v29 }
 0xaec   : > { %v1377_v19 = vpop.xlane.xlu1 %1376 }
 0xaed   : > { %v1379_v58 = vmul.f32 %v1377_v19, %v2020_v10 }
 0xaef   : > { %v1381_v30 = vsub.f32 %v1371_v8, %v1379_v58 }
 0xaf1   : > { %v1383_v31 = vmul.f32 %v1381_v30, %v1381_v30 }
 0xaf3   : > { %v1387_v39 = vsel %vm449_vm1, %v1383_v31, 0.0 }
 0xaf4   : > { %1388 = vadd.xlane.f32.xlu0 %v1387_v39 }
 0xb67   : > { %v1389_v43 = vpop.xlane.xlu0 %1388 }
 0xb68   : > { %v1391_v32 = vmul.f32 %v1389_v43, %v2020_v10 }
 0xb6a   : > { %v1393_v33 = vadd.f32 1e-06, %v1391_v32 }
 0xb6c   : > { %1828 = vrsqrt.f32 %v1393_v33  ;;  %vm1410_vm3 = vweird.f32 %v1393_v33 }
 0xb72   : > { %v1829_v34 = vpop.eup %1828 }
 0xb73   : > { %v1405_v35 = vmul.f32 %v1829_v34, %v1393_v33  ;;  %vm1411_vm2 = vweird.f32 %v1829_v34 }
 0xb74   : > { %vm1412_vm4 = vmor %vm1410_vm3, %vm1411_vm2 }
 0xb75   : > { %v1406_v37 = vmul.f32 %v1829_v34, %v1405_v35 }
 0xb77   : > { %v1407_v40 = vmul.f32 0.5, %v1406_v37 }
 0xb79   : > { %v1408_v44 = vsub.f32 1.5, %v1407_v40 }
 0xb7b   : > { %v1409_v41 = vmul.f32 %v1829_v34, %v1408_v44 }
 0xb7d   : > { %v1413_v42 = vsel %vm1412_vm4, %v1829_v34, %v1409_v41 }
 0xb7e   : > { %v1415_v45 = vmul.f32 %v1413_v42, %v1381_v30 }
 0xb80   : > { %v1418_v46 = vmul.f32 %v1416_v21, %v1415_v45 }
 0xb82   : > { %v1421_v47 = vadd.f32 %v1419_v52, %v1418_v46 }
 0xb84   : > { %1723 = vmatmul.msk.f32.gmra.mxu3 %vm449_vm1, %v1421_v47 }
 0xc07   : > { %v1456_v10 = vpop.f32.mrf.mxu3 }
 0xc08   : > { %v1457_v48 = vadd.f32 %v1785_v3, %v1456_v10 }
 0xc0a   : > { %v1462_v18 = vmul.f32 %v1457_v48, %v1457_v48  ;;  %v1460_v54 = vmul.f32 0.5, %v1457_v48 }
 0xc0c   : > { %v1464_v20 = vmul.f32 %v1462_v18, %v1457_v48 }
 0xc0e   : > { %v1466_v2 = vmul.f32 0.044715, %v1464_v20 }
 0xc10   : > { %v1468_v49 = vadd.f32 %v1466_v2, %v1457_v48 }
 0xc12   : > { %v1470_v50 = vmul.f32 0.7978846, %v1468_v49 }
 0xc14   : > { %1830 = vtanh.f32 %v1470_v50 }
 0xc1a   : > { %v1831_v53 = vpop.eup %1830 }
 0xc1b   : > { %v1474_v36 = vadd.f32 1.0, %v1831_v53 }
 0xc1d   : > { %v1476_v55 = vmul.f32 %v1474_v36, %v1460_v54 }
 0xc1f   : > { %1725 = vmatmul.msk.f32.gmra.mxu0 %vm1486_vm6, %v1476_v55 }
 0xc9c   : > { %v1513_v21 = vpop.f32.mrf.mxu0 }
 0xc9d   : > { %v1514_v56 = vadd.f32 %v1513_v21, %v1485_v25  ;;  %1523 = sbr.rel (%p1726_p6) target bundleno = 3242 (0xcaa), region = 60 }
 0xc9f   : > { %v1517_v28 = vadd.f32 %v1514_v56, %v1371_v8 }
 0xca1   : > { %1519 = vst.msk [vmem:[#allocation2 + $0x8] sm:$0xff] %vm449_vm1, %v1517_v28 }
 0xca2   : > { %v1524_v52 = vld [vmem:[#allocation2] sm:$0xff] }
 0xca3   : > { %1526 = vst.msk [vmem:[#allocation3] sm:$0xff] %vm449_vm1, %v1524_v52 }
 0xca8   : > { %v1525_v57 = vld [vmem:[#allocation2 + $0x8] sm:$0xff] }
 0xca9   : > { %1527 = vst.msk [vmem:[#allocation3 + $0x8] sm:$0xff] %vm449_vm1, %v1525_v57 }
 0xcaa PF: > { %s2269_s10 = sadd.s32 4294967295, %s1886_s29   ;;  %s1538_s14 = sshll.u32 %s2267_s8, 4  ;;  %s1539_s14 = int_to_ptr.hbm [resolvable:$true] %s1538_s14 }
 0xcab   : > { %p1743_p7 = scmp.eq.s32.totalorder %s2269_s10, 1  ;;  %s1900_s17 = smov [#allocation3]  }
 0xcac   : > { %s1536_s25 = sshll.u32 %s1900_s17, 4  ;;  %s1901_s27 = smov 128   ;;  %s1537_s25 = int_to_ptr.vmem [resolvable:$true] %s1536_s25 }
 0xcad   : > { %s1902_s12 = smov 8  }
 0xcae   : > { %1740 = dma.vmem_to_hbm [thread:$0]  (%p1743_p7), %s1537_s25, 256, %s1539_s14, [#allocation4], %s1901_s27, %s1901_s27, %s1902_s12  }
 0xcaf   : > { %1873 = dma.done.wait (%p1743_p7), [#allocation4], 256  }
 0xcb0   : > { %1875 = vsyncadd (%p1743_p7), [#allocation4], 4294967040 }
 0xcb1 PF: > { %s19_s29 = sadd.s32 1, %s1886_s29   ;;  %s2270_s27 = smov %s1882_s28 }
 0xcb2   : > { %p16_p8 = scmp.ge.s32.totalorder %s19_s29, 4   ;;  %s2271_s28 = smov %s2273_s9 }
 0xcb4   :  { %18 = sbr.rel (!%p16_p8) target bundleno = 2 (0x2), region = 109 }
 0xcb9   :  { %1555 = vsyncpa [#allocation4], 1 }
 0xcba   :  { %1557 = vsyncpa [#allocation4 + $0x1], 1 }

</bundles_post_ra>
